<compile_context>
chip_gen: v7x
topology: tpu7x:2x2x1
jax: 0.10.0
libtpu: 0.0.40
codegen_flags: <defaults>
</compile_context>

<pallas_src>
import math
import jax
import jax.numpy as jnp
from jax.experimental import pallas as pl
from jax.experimental.pallas import tpu as pltpu


def _round_up(x, m):
    return ((x + m - 1) // m) * m


def _pick_block(total, cap):
    """Largest b with total % b == 0, b <= cap, and b valid as a second-to-last
    block dim (b == total or b % 8 == 0)."""
    if total <= cap:
        return total
    for b in range(cap, 0, -1):
        if total % b == 0 and (b % 8 == 0 or b == total):
            return b
    return total


def _pad_gate_cols(w, H, Hp):
    """(R, 4H) -> (R, 4Hp): zero-pad each gate's column block to Hp lanes."""
    if Hp == H:
        return w
    R = w.shape[0]
    wg = w.reshape(R, 4, H)
    wg = jnp.pad(wg, ((0, 0), (0, 0), (0, Hp - H)))
    return wg.reshape(R, 4 * Hp)


def _lstm_recurrent_kernel(ax_ref, h0_ref, wh_ref, h_out_ref, prev_h, prev_c):
    """One grid step == one (batch-block, time-block) tile of the recurrence.

    ax_ref:    (Nb, Tb, 4Hp)  precomputed x@Wx + b for this tile (f32)
    h0_ref:    (Nb, Hp)       initial hidden state for this batch block (f32)
    wh_ref:    (Hp, 4Hp)      hidden-to-hidden weights (resident across steps)
    h_out_ref: (Nb, Tb, Hp)   hidden-state output tile
    prev_h/prev_c: (Nb, Hp)   f32 VMEM carry across time blocks
    """
    tb = pl.program_id(1)
    Tb = ax_ref.shape[1]
    Hp = prev_h.shape[1]

    @pl.when(tb == 0)
    def _():
        prev_h[...] = h0_ref[...].astype(prev_h.dtype)
        prev_c[...] = jnp.zeros_like(prev_c)

    wh = wh_ref[...]           # loaded once per grid step, reused Tb times
    h = prev_h[...]
    c = prev_c[...]

    # Fully-unrolled static loop over the Tb timesteps of this block: the
    # (h, c) carry stays in registers; scratch is only touched at block edges.
    for t in range(Tb):
        a = ax_ref[:, t, :] + jnp.dot(h.astype(wh.dtype), wh,
                                      preferred_element_type=jnp.float32)
        ifo = jax.nn.sigmoid(a[:, 0:3 * Hp])       # one lane-aligned sigmoid
        i = ifo[:, 0:Hp]
        f = ifo[:, Hp:2 * Hp]
        o = ifo[:, 2 * Hp:3 * Hp]
        g = jnp.tanh(a[:, 3 * Hp:4 * Hp])
        c = f * c + i * g
        h = o * jnp.tanh(c)
        h_out_ref[:, t, :] = h.astype(h_out_ref.dtype)

    prev_h[...] = h
    prev_c[...] = c


def lstm_forward_pallas(x, h0, Wx, Wh, b, *, param_dtype=None,
                        time_block=8, batch_block=256):
    """x: (N, T, D), h0: (N, H), Wx: (D, 4H), Wh: (H, 4H), b: (4H,)
    Returns h: (N, T, H) — hidden states for every timestep.

    param_dtype: optional dtype (e.g. jnp.bfloat16) for the matmul operands;
    accumulation and the (h, c) recurrence always stay in float32.
    """
    N, T, D = x.shape
    H = h0.shape[1]
    assert Wx.shape == (D, 4 * H)
    assert Wh.shape == (H, 4 * H)
    assert b.shape == (4 * H,)

    out_dtype = x.dtype
    mm_dtype = jnp.dtype(param_dtype) if param_dtype is not None else x.dtype

    # Lane-align the gates: pad H to a multiple of 128 so the i/f/o/g slices
    # fall on vreg lane boundaries. Padding is exact zeros => results unchanged.
    Hp = H if H % 128 == 0 else _round_up(H, 128)

    # ---- hoisted input projection: one big matmul, bias folded in ----------
    Wx_p = _pad_gate_cols(Wx, H, Hp).astype(mm_dtype)
    b_p = _pad_gate_cols(b.reshape(1, 4 * H), H, Hp).reshape(4 * Hp)
    ax = jnp.dot(x.reshape(N * T, D).astype(mm_dtype), Wx_p,
                 preferred_element_type=jnp.float32) + b_p.astype(jnp.float32)
    ax = ax.reshape(N, T, 4 * Hp)                       # (N, T, 4Hp), f32

    # ---- recurrent-kernel operands ------------------------------------------
    Wh_p = jnp.pad(Wh, ((0, Hp - H), (0, 0)))           # zero rows: pad-h inert
    Wh_p = _pad_gate_cols(Wh_p, H, Hp).astype(mm_dtype)            # (Hp, 4Hp)
    h0_p = jnp.pad(h0.astype(jnp.float32), ((0, 0), (0, Hp - H)))  # (N, Hp)

    Tb = _pick_block(T, time_block)
    Nb = _pick_block(N, batch_block)
    grid = (N // Nb, T // Tb)            # (batch blocks, time blocks)

    out = pl.pallas_call(
        _lstm_recurrent_kernel,
        out_shape=jax.ShapeDtypeStruct((N, T, Hp), out_dtype),
        grid=grid,
        in_specs=[
            pl.BlockSpec((Nb, Tb, 4 * Hp), lambda nb, tb: (nb, tb, 0)),  # A_x
            pl.BlockSpec((Nb, Hp), lambda nb, tb: (nb, 0)),              # h0
            # Wh: constant index_map -> stays resident (re-DMA is skipped).
            # NOTE(perf): for very large H, preload Wh to scratch or single-
            # buffer it to halve its VMEM footprint.
            pl.BlockSpec((Hp, 4 * Hp), lambda nb, tb: (0, 0)),           # Wh
        ],
        out_specs=pl.BlockSpec((Nb, Tb, Hp), lambda nb, tb: (nb, tb, 0)),
        scratch_shapes=[
            pltpu.VMEM((Nb, Hp), jnp.float32),           # prev_h carry
            pltpu.VMEM((Nb, Hp), jnp.float32),           # prev_c carry
        ],
        compiler_params=pltpu.CompilerParams(
            dimension_semantics=("parallel", "arbitrary"),  # time is sequential
            vmem_limit_bytes=48 * 1024 * 1024,
        ),
    )(ax, h0_p, Wh_p)

    return out if Hp == H else out[:, :, :H]


def lstm_forward_ref(x, h0, Wx, Wh, b):
    """Plain-JAX reference mirroring the PyTorch lstm_forward."""
    N, T, D = x.shape
    H = h0.shape[1]
    prev_h = h0.astype(jnp.float32)
    prev_c = jnp.zeros_like(prev_h)
    hs = []
    for t in range(T):
        a = x[:, t, :].astype(jnp.float32) @ Wx + prev_h @ Wh + b
        i = jax.nn.sigmoid(a[:, 0:H])
        f = jax.nn.sigmoid(a[:, H:2 * H])
        o = jax.nn.sigmoid(a[:, 2 * H:3 * H])
        g = jnp.tanh(a[:, 3 * H:4 * H])
        prev_c = f * prev_c + i * g
        prev_h = o * jnp.tanh(prev_c)
        hs.append(prev_h)
    return jnp.stack(hs, axis=1).astype(x.dtype)


if __name__ == "__main__":
    # Small deterministic setup consistent with the module:
    #   N (batch) = 2, T (seq) = 8, D (input) = 32, H (hidden) = 32
    N, T, D, H = 2, 8, 32, 32
    key = jax.random.PRNGKey(0)
    kx, kh0, kwx, kwh = jax.random.split(key, 4)

    x = jax.random.normal(kx, (N, T, D), dtype=jnp.float32)
    h0 = jax.random.normal(kh0, (N, H), dtype=jnp.float32)

    # Parameter init mirrors the nn.Module __init__: randn / sqrt(fan_in), zero bias.
    Wx = jax.random.normal(kwx, (D, 4 * H), dtype=jnp.float32) / math.sqrt(D)
    Wh = jax.random.normal(kwh, (H, 4 * H), dtype=jnp.float32) / math.sqrt(H)
    b = jnp.zeros((4 * H,), dtype=jnp.float32)

    h_ref = lstm_forward_ref(x, h0, Wx, Wh, b)

    # float32 path — matches the PyTorch module numerics.
    h_kernel = lstm_forward_pallas(x, h0, Wx, Wh, b)
    jax.block_until_ready(h_kernel)
    assert h_kernel.shape == (N, T, H)
    err = float(jnp.max(jnp.abs(h_kernel - h_ref)))
    assert jnp.allclose(h_kernel, h_ref, atol=1e-5, rtol=1e-5), err

    # Optional bf16 matmul-operand fast path (perf option) — looser check.
    h_bf16 = lstm_forward_pallas(x, h0, Wx, Wh, b, param_dtype=jnp.bfloat16)
    jax.block_until_ready(h_bf16)
    err_bf16 = float(jnp.max(jnp.abs(h_bf16 - h_ref)))
    assert err_bf16 < 0.15, err_bf16

    print("KERNEL_OK")
</pallas_src>

<mosaic_0001>
module attributes {stable_mosaic.version = 11 : i64} {
  func.func @_lstm_recurrent_kernel(%arg0: i32, %arg1: i32, %arg2: memref<2x8x512xf32, #tpu.memory_space<vmem>>, %arg3: memref<2x128xf32, #tpu.memory_space<vmem>>, %arg4: memref<128x512xf32, #tpu.memory_space<vmem>>, %arg5: memref<2x8x128xf32, #tpu.memory_space<vmem>>, %arg6: memref<2x128xf32, #tpu.memory_space<vmem>>, %arg7: memref<2x128xf32, #tpu.memory_space<vmem>>) attributes {dimension_semantics = [#tpu.dimension_semantics<parallel>, #tpu.dimension_semantics<arbitrary>], iteration_bounds = array<i64: 1, 1>, scalar_prefetch = 0 : i64, scratch_operands = 2 : i64, tpu.core_type = #tpu.core_type<tc>, window_params = [{transform_indices = @transform_0, window_bounds = array<i64: 2, 8, 512>}, {transform_indices = @transform_1, window_bounds = array<i64: 2, 128>}, {pipeline_mode = #tpu.pipeline_mode<synchronous>, transform_indices = @transform_2, window_bounds = array<i64: 128, 512>}, {transform_indices = @transform_3, window_bounds = array<i64: 2, 8, 128>}]} {
    %c0_i32 = arith.constant 0 : i32
    %0 = arith.cmpi eq, %arg1, %c0_i32 : i32
    %1 = arith.extui %0 : i1 to i32
    %c0_i32_0 = arith.constant 0 : i32
    %2 = arith.cmpi ne, %1, %c0_i32_0 : i32
    scf.if %2 {
      %c0_66 = arith.constant 0 : index
      %c0_67 = arith.constant 0 : index
      %192 = vector.load %arg3[%c0_66, %c0_67] : memref<2x128xf32, #tpu.memory_space<vmem>>, vector<2x128xf32>
      %c0_68 = arith.constant 0 : index
      %c0_69 = arith.constant 0 : index
      %193 = vector.load %arg6[%c0_68, %c0_69] : memref<2x128xf32, #tpu.memory_space<vmem>>, vector<2x128xf32>
      tpu.vector_store %arg6[%c0_68, %c0_69], %192 {strides = array<i32>} : memref<2x128xf32, #tpu.memory_space<vmem>>, vector<2x128xf32>,
      %cst_70 = arith.constant 0.000000e+00 : f32
      %194 = vector.broadcast %cst_70 : f32 to vector<2x128xf32>
      %c0_71 = arith.constant 0 : index
      %c0_72 = arith.constant 0 : index
      %195 = vector.load %arg7[%c0_71, %c0_72] : memref<2x128xf32, #tpu.memory_space<vmem>>, vector<2x128xf32>
      tpu.vector_store %arg7[%c0_71, %c0_72], %194 {strides = array<i32>} : memref<2x128xf32, #tpu.memory_space<vmem>>, vector<2x128xf32>,
    } else {
    }
    %c0 = arith.constant 0 : index
    %c0_1 = arith.constant 0 : index
    %3 = vector.load %arg4[%c0, %c0_1] : memref<128x512xf32, #tpu.memory_space<vmem>>, vector<128x512xf32>
    %c0_2 = arith.constant 0 : index
    %c0_3 = arith.constant 0 : index
    %4 = vector.load %arg6[%c0_2, %c0_3] : memref<2x128xf32, #tpu.memory_space<vmem>>, vector<2x128xf32>
    %c0_4 = arith.constant 0 : index
    %c0_5 = arith.constant 0 : index
    %5 = vector.load %arg7[%c0_4, %c0_5] : memref<2x128xf32, #tpu.memory_space<vmem>>, vector<2x128xf32>
    %c0_6 = arith.constant 0 : index
    %c0_7 = arith.constant 0 : index
    %c0_8 = arith.constant 0 : index
    %6 = vector.load %arg2[%c0_6, %c0_7, %c0_8] : memref<2x8x512xf32, #tpu.memory_space<vmem>>, vector<2x1x512xf32>
    %7 = vector.shape_cast %6 : vector<2x1x512xf32> to vector<2x512xf32>
    %cst = arith.constant dense<0.000000e+00> : vector<2x512xf32>
    %8 = tpu.matmul %4, %3, %cst {dimension_numbers = #tpu.dot_dimension_numbers<[1], [0], [0], [1], [0, 0, 1, 1], [], []>} : vector<2x128xf32>, vector<128x512xf32>, vector<2x512xf32> -> vector<2x512xf32>
    %9 = arith.addf %7, %8 : vector<2x512xf32>
    %10 = vector.extract_strided_slice %9 {offsets = [0, 0], sizes = [2, 384], strides = [1, 1]} : vector<2x512xf32> to vector<2x384xf32>
    %11 = arith.negf %10 : vector<2x384xf32>
    %12 = math.exp %11 : vector<2x384xf32>
    %cst_9 = arith.constant 1.000000e+00 : f32
    %13 = vector.broadcast %cst_9 : f32 to vector<2x384xf32>
    %14 = arith.addf %13, %12 : vector<2x384xf32>
    %15 = arith.divf %13, %14 : vector<2x384xf32>
    %16 = vector.extract_strided_slice %15 {offsets = [0, 0], sizes = [2, 128], strides = [1, 1]} : vector<2x384xf32> to vector<2x128xf32>
    %17 = vector.extract_strided_slice %15 {offsets = [0, 128], sizes = [2, 128], strides = [1, 1]} : vector<2x384xf32> to vector<2x128xf32>
    %18 = vector.extract_strided_slice %15 {offsets = [0, 256], sizes = [2, 128], strides = [1, 1]} : vector<2x384xf32> to vector<2x128xf32>
    %19 = vector.extract_strided_slice %9 {offsets = [0, 384], sizes = [2, 128], strides = [1, 1]} : vector<2x512xf32> to vector<2x128xf32>
    %20 = math.tanh %19 : vector<2x128xf32>
    %21 = arith.mulf %17, %5 : vector<2x128xf32>
    %22 = arith.mulf %16, %20 : vector<2x128xf32>
    %23 = arith.addf %21, %22 : vector<2x128xf32>
    %24 = math.tanh %23 : vector<2x128xf32>
    %25 = arith.mulf %18, %24 : vector<2x128xf32>
    %c0_10 = arith.constant 0 : index
    %c0_11 = arith.constant 0 : index
    %c0_12 = arith.constant 0 : index
    %26 = vector.load %arg5[%c0_10, %c0_11, %c0_12] : memref<2x8x128xf32, #tpu.memory_space<vmem>>, vector<2x1x128xf32>
    %27 = vector.shape_cast %26 : vector<2x1x128xf32> to vector<2x128xf32>
    %28 = vector.shape_cast %25 : vector<2x128xf32> to vector<2x1x128xf32>
    tpu.vector_store %arg5[%c0_10, %c0_11, %c0_12], %28 {strides = array<i32>} : memref<2x8x128xf32, #tpu.memory_space<vmem>>, vector<2x1x128xf32>,
    %c0_13 = arith.constant 0 : index
    %c1 = arith.constant 1 : index
    %c0_14 = arith.constant 0 : index
    %29 = vector.load %arg2[%c0_13, %c1, %c0_14] : memref<2x8x512xf32, #tpu.memory_space<vmem>>, vector<2x1x512xf32>
    %30 = vector.shape_cast %29 : vector<2x1x512xf32> to vector<2x512xf32>
    %cst_15 = arith.constant dense<0.000000e+00> : vector<2x512xf32>
    %31 = tpu.matmul %25, %3, %cst_15 {dimension_numbers = #tpu.dot_dimension_numbers<[1], [0], [0], [1], [0, 0, 1, 1], [], []>} : vector<2x128xf32>, vector<128x512xf32>, vector<2x512xf32> -> vector<2x512xf32>
    %32 = arith.addf %30, %31 : vector<2x512xf32>
    %33 = vector.extract_strided_slice %32 {offsets = [0, 0], sizes = [2, 384], strides = [1, 1]} : vector<2x512xf32> to vector<2x384xf32>
    %34 = arith.negf %33 : vector<2x384xf32>
    %35 = math.exp %34 : vector<2x384xf32>
    %cst_16 = arith.constant 1.000000e+00 : f32
    %36 = vector.broadcast %cst_16 : f32 to vector<2x384xf32>
    %37 = arith.addf %36, %35 : vector<2x384xf32>
    %38 = arith.divf %36, %37 : vector<2x384xf32>
    %39 = vector.extract_strided_slice %38 {offsets = [0, 0], sizes = [2, 128], strides = [1, 1]} : vector<2x384xf32> to vector<2x128xf32>
    %40 = vector.extract_strided_slice %38 {offsets = [0, 128], sizes = [2, 128], strides = [1, 1]} : vector<2x384xf32> to vector<2x128xf32>
    %41 = vector.extract_strided_slice %38 {offsets = [0, 256], sizes = [2, 128], strides = [1, 1]} : vector<2x384xf32> to vector<2x128xf32>
    %42 = vector.extract_strided_slice %32 {offsets = [0, 384], sizes = [2, 128], strides = [1, 1]} : vector<2x512xf32> to vector<2x128xf32>
    %43 = math.tanh %42 : vector<2x128xf32>
    %44 = arith.mulf %40, %23 : vector<2x128xf32>
    %45 = arith.mulf %39, %43 : vector<2x128xf32>
    %46 = arith.addf %44, %45 : vector<2x128xf32>
    %47 = math.tanh %46 : vector<2x128xf32>
    %48 = arith.mulf %41, %47 : vector<2x128xf32>
    %c0_17 = arith.constant 0 : index
    %c1_18 = arith.constant 1 : index
    %c0_19 = arith.constant 0 : index
    %49 = vector.load %arg5[%c0_17, %c1_18, %c0_19] : memref<2x8x128xf32, #tpu.memory_space<vmem>>, vector<2x1x128xf32>
    %50 = vector.shape_cast %49 : vector<2x1x128xf32> to vector<2x128xf32>
    %51 = vector.shape_cast %48 : vector<2x128xf32> to vector<2x1x128xf32>
    tpu.vector_store %arg5[%c0_17, %c1_18, %c0_19], %51 {strides = array<i32>} : memref<2x8x128xf32, #tpu.memory_space<vmem>>, vector<2x1x128xf32>,
    %c0_20 = arith.constant 0 : index
    %c2 = arith.constant 2 : index
    %c0_21 = arith.constant 0 : index
    %52 = vector.load %arg2[%c0_20, %c2, %c0_21] : memref<2x8x512xf32, #tpu.memory_space<vmem>>, vector<2x1x512xf32>
    %53 = vector.shape_cast %52 : vector<2x1x512xf32> to vector<2x512xf32>
    %cst_22 = arith.constant dense<0.000000e+00> : vector<2x512xf32>
    %54 = tpu.matmul %48, %3, %cst_22 {dimension_numbers = #tpu.dot_dimension_numbers<[1], [0], [0], [1], [0, 0, 1, 1], [], []>} : vector<2x128xf32>, vector<128x512xf32>, vector<2x512xf32> -> vector<2x512xf32>
    %55 = arith.addf %53, %54 : vector<2x512xf32>
    %56 = vector.extract_strided_slice %55 {offsets = [0, 0], sizes = [2, 384], strides = [1, 1]} : vector<2x512xf32> to vector<2x384xf32>
    %57 = arith.negf %56 : vector<2x384xf32>
    %58 = math.exp %57 : vector<2x384xf32>
    %cst_23 = arith.constant 1.000000e+00 : f32
    %59 = vector.broadcast %cst_23 : f32 to vector<2x384xf32>
    %60 = arith.addf %59, %58 : vector<2x384xf32>
    %61 = arith.divf %59, %60 : vector<2x384xf32>
    %62 = vector.extract_strided_slice %61 {offsets = [0, 0], sizes = [2, 128], strides = [1, 1]} : vector<2x384xf32> to vector<2x128xf32>
    %63 = vector.extract_strided_slice %61 {offsets = [0, 128], sizes = [2, 128], strides = [1, 1]} : vector<2x384xf32> to vector<2x128xf32>
    %64 = vector.extract_strided_slice %61 {offsets = [0, 256], sizes = [2, 128], strides = [1, 1]} : vector<2x384xf32> to vector<2x128xf32>
    %65 = vector.extract_strided_slice %55 {offsets = [0, 384], sizes = [2, 128], strides = [1, 1]} : vector<2x512xf32> to vector<2x128xf32>
    %66 = math.tanh %65 : vector<2x128xf32>
    %67 = arith.mulf %63, %46 : vector<2x128xf32>
    %68 = arith.mulf %62, %66 : vector<2x128xf32>
    %69 = arith.addf %67, %68 : vector<2x128xf32>
    %70 = math.tanh %69 : vector<2x128xf32>
    %71 = arith.mulf %64, %70 : vector<2x128xf32>
    %c0_24 = arith.constant 0 : index
    %c2_25 = arith.constant 2 : index
    %c0_26 = arith.constant 0 : index
    %72 = vector.load %arg5[%c0_24, %c2_25, %c0_26] : memref<2x8x128xf32, #tpu.memory_space<vmem>>, vector<2x1x128xf32>
    %73 = vector.shape_cast %72 : vector<2x1x128xf32> to vector<2x128xf32>
    %74 = vector.shape_cast %71 : vector<2x128xf32> to vector<2x1x128xf32>
    tpu.vector_store %arg5[%c0_24, %c2_25, %c0_26], %74 {strides = array<i32>} : memref<2x8x128xf32, #tpu.memory_space<vmem>>, vector<2x1x128xf32>,
    %c0_27 = arith.constant 0 : index
    %c3 = arith.constant 3 : index
    %c0_28 = arith.constant 0 : index
    %75 = vector.load %arg2[%c0_27, %c3, %c0_28] : memref<2x8x512xf32, #tpu.memory_space<vmem>>, vector<2x1x512xf32>
    %76 = vector.shape_cast %75 : vector<2x1x512xf32> to vector<2x512xf32>
    %cst_29 = arith.constant dense<0.000000e+00> : vector<2x512xf32>
    %77 = tpu.matmul %71, %3, %cst_29 {dimension_numbers = #tpu.dot_dimension_numbers<[1], [0], [0], [1], [0, 0, 1, 1], [], []>} : vector<2x128xf32>, vector<128x512xf32>, vector<2x512xf32> -> vector<2x512xf32>
    %78 = arith.addf %76, %77 : vector<2x512xf32>
    %79 = vector.extract_strided_slice %78 {offsets = [0, 0], sizes = [2, 384], strides = [1, 1]} : vector<2x512xf32> to vector<2x384xf32>
    %80 = arith.negf %79 : vector<2x384xf32>
    %81 = math.exp %80 : vector<2x384xf32>
    %cst_30 = arith.constant 1.000000e+00 : f32
    %82 = vector.broadcast %cst_30 : f32 to vector<2x384xf32>
    %83 = arith.addf %82, %81 : vector<2x384xf32>
    %84 = arith.divf %82, %83 : vector<2x384xf32>
    %85 = vector.extract_strided_slice %84 {offsets = [0, 0], sizes = [2, 128], strides = [1, 1]} : vector<2x384xf32> to vector<2x128xf32>
    %86 = vector.extract_strided_slice %84 {offsets = [0, 128], sizes = [2, 128], strides = [1, 1]} : vector<2x384xf32> to vector<2x128xf32>
    %87 = vector.extract_strided_slice %84 {offsets = [0, 256], sizes = [2, 128], strides = [1, 1]} : vector<2x384xf32> to vector<2x128xf32>
    %88 = vector.extract_strided_slice %78 {offsets = [0, 384], sizes = [2, 128], strides = [1, 1]} : vector<2x512xf32> to vector<2x128xf32>
    %89 = math.tanh %88 : vector<2x128xf32>
    %90 = arith.mulf %86, %69 : vector<2x128xf32>
    %91 = arith.mulf %85, %89 : vector<2x128xf32>
    %92 = arith.addf %90, %91 : vector<2x128xf32>
    %93 = math.tanh %92 : vector<2x128xf32>
    %94 = arith.mulf %87, %93 : vector<2x128xf32>
    %c0_31 = arith.constant 0 : index
    %c3_32 = arith.constant 3 : index
    %c0_33 = arith.constant 0 : index
    %95 = vector.load %arg5[%c0_31, %c3_32, %c0_33] : memref<2x8x128xf32, #tpu.memory_space<vmem>>, vector<2x1x128xf32>
    %96 = vector.shape_cast %95 : vector<2x1x128xf32> to vector<2x128xf32>
    %97 = vector.shape_cast %94 : vector<2x128xf32> to vector<2x1x128xf32>
    tpu.vector_store %arg5[%c0_31, %c3_32, %c0_33], %97 {strides = array<i32>} : memref<2x8x128xf32, #tpu.memory_space<vmem>>, vector<2x1x128xf32>,
    %c0_34 = arith.constant 0 : index
    %c4 = arith.constant 4 : index
    %c0_35 = arith.constant 0 : index
    %98 = vector.load %arg2[%c0_34, %c4, %c0_35] : memref<2x8x512xf32, #tpu.memory_space<vmem>>, vector<2x1x512xf32>
    %99 = vector.shape_cast %98 : vector<2x1x512xf32> to vector<2x512xf32>
    %cst_36 = arith.constant dense<0.000000e+00> : vector<2x512xf32>
    %100 = tpu.matmul %94, %3, %cst_36 {dimension_numbers = #tpu.dot_dimension_numbers<[1], [0], [0], [1], [0, 0, 1, 1], [], []>} : vector<2x128xf32>, vector<128x512xf32>, vector<2x512xf32> -> vector<2x512xf32>
    %101 = arith.addf %99, %100 : vector<2x512xf32>
    %102 = vector.extract_strided_slice %101 {offsets = [0, 0], sizes = [2, 384], strides = [1, 1]} : vector<2x512xf32> to vector<2x384xf32>
    %103 = arith.negf %102 : vector<2x384xf32>
    %104 = math.exp %103 : vector<2x384xf32>
    %cst_37 = arith.constant 1.000000e+00 : f32
    %105 = vector.broadcast %cst_37 : f32 to vector<2x384xf32>
    %106 = arith.addf %105, %104 : vector<2x384xf32>
    %107 = arith.divf %105, %106 : vector<2x384xf32>
    %108 = vector.extract_strided_slice %107 {offsets = [0, 0], sizes = [2, 128], strides = [1, 1]} : vector<2x384xf32> to vector<2x128xf32>
    %109 = vector.extract_strided_slice %107 {offsets = [0, 128], sizes = [2, 128], strides = [1, 1]} : vector<2x384xf32> to vector<2x128xf32>
    %110 = vector.extract_strided_slice %107 {offsets = [0, 256], sizes = [2, 128], strides = [1, 1]} : vector<2x384xf32> to vector<2x128xf32>
    %111 = vector.extract_strided_slice %101 {offsets = [0, 384], sizes = [2, 128], strides = [1, 1]} : vector<2x512xf32> to vector<2x128xf32>
    %112 = math.tanh %111 : vector<2x128xf32>
    %113 = arith.mulf %109, %92 : vector<2x128xf32>
    %114 = arith.mulf %108, %112 : vector<2x128xf32>
    %115 = arith.addf %113, %114 : vector<2x128xf32>
    %116 = math.tanh %115 : vector<2x128xf32>
    %117 = arith.mulf %110, %116 : vector<2x128xf32>
    %c0_38 = arith.constant 0 : index
    %c4_39 = arith.constant 4 : index
    %c0_40 = arith.constant 0 : index
    %118 = vector.load %arg5[%c0_38, %c4_39, %c0_40] : memref<2x8x128xf32, #tpu.memory_space<vmem>>, vector<2x1x128xf32>
    %119 = vector.shape_cast %118 : vector<2x1x128xf32> to vector<2x128xf32>
    %120 = vector.shape_cast %117 : vector<2x128xf32> to vector<2x1x128xf32>
    tpu.vector_store %arg5[%c0_38, %c4_39, %c0_40], %120 {strides = array<i32>} : memref<2x8x128xf32, #tpu.memory_space<vmem>>, vector<2x1x128xf32>,
    %c0_41 = arith.constant 0 : index
    %c5 = arith.constant 5 : index
    %c0_42 = arith.constant 0 : index
    %121 = vector.load %arg2[%c0_41, %c5, %c0_42] : memref<2x8x512xf32, #tpu.memory_space<vmem>>, vector<2x1x512xf32>
    %122 = vector.shape_cast %121 : vector<2x1x512xf32> to vector<2x512xf32>
    %cst_43 = arith.constant dense<0.000000e+00> : vector<2x512xf32>
    %123 = tpu.matmul %117, %3, %cst_43 {dimension_numbers = #tpu.dot_dimension_numbers<[1], [0], [0], [1], [0, 0, 1, 1], [], []>} : vector<2x128xf32>, vector<128x512xf32>, vector<2x512xf32> -> vector<2x512xf32>
    %124 = arith.addf %122, %123 : vector<2x512xf32>
    %125 = vector.extract_strided_slice %124 {offsets = [0, 0], sizes = [2, 384], strides = [1, 1]} : vector<2x512xf32> to vector<2x384xf32>
    %126 = arith.negf %125 : vector<2x384xf32>
    %127 = math.exp %126 : vector<2x384xf32>
    %cst_44 = arith.constant 1.000000e+00 : f32
    %128 = vector.broadcast %cst_44 : f32 to vector<2x384xf32>
    %129 = arith.addf %128, %127 : vector<2x384xf32>
    %130 = arith.divf %128, %129 : vector<2x384xf32>
    %131 = vector.extract_strided_slice %130 {offsets = [0, 0], sizes = [2, 128], strides = [1, 1]} : vector<2x384xf32> to vector<2x128xf32>
    %132 = vector.extract_strided_slice %130 {offsets = [0, 128], sizes = [2, 128], strides = [1, 1]} : vector<2x384xf32> to vector<2x128xf32>
    %133 = vector.extract_strided_slice %130 {offsets = [0, 256], sizes = [2, 128], strides = [1, 1]} : vector<2x384xf32> to vector<2x128xf32>
    %134 = vector.extract_strided_slice %124 {offsets = [0, 384], sizes = [2, 128], strides = [1, 1]} : vector<2x512xf32> to vector<2x128xf32>
    %135 = math.tanh %134 : vector<2x128xf32>
    %136 = arith.mulf %132, %115 : vector<2x128xf32>
    %137 = arith.mulf %131, %135 : vector<2x128xf32>
    %138 = arith.addf %136, %137 : vector<2x128xf32>
    %139 = math.tanh %138 : vector<2x128xf32>
    %140 = arith.mulf %133, %139 : vector<2x128xf32>
    %c0_45 = arith.constant 0 : index
    %c5_46 = arith.constant 5 : index
    %c0_47 = arith.constant 0 : index
    %141 = vector.load %arg5[%c0_45, %c5_46, %c0_47] : memref<2x8x128xf32, #tpu.memory_space<vmem>>, vector<2x1x128xf32>
    %142 = vector.shape_cast %141 : vector<2x1x128xf32> to vector<2x128xf32>
    %143 = vector.shape_cast %140 : vector<2x128xf32> to vector<2x1x128xf32>
    tpu.vector_store %arg5[%c0_45, %c5_46, %c0_47], %143 {strides = array<i32>} : memref<2x8x128xf32, #tpu.memory_space<vmem>>, vector<2x1x128xf32>,
    %c0_48 = arith.constant 0 : index
    %c6 = arith.constant 6 : index
    %c0_49 = arith.constant 0 : index
    %144 = vector.load %arg2[%c0_48, %c6, %c0_49] : memref<2x8x512xf32, #tpu.memory_space<vmem>>, vector<2x1x512xf32>
    %145 = vector.shape_cast %144 : vector<2x1x512xf32> to vector<2x512xf32>
    %cst_50 = arith.constant dense<0.000000e+00> : vector<2x512xf32>
    %146 = tpu.matmul %140, %3, %cst_50 {dimension_numbers = #tpu.dot_dimension_numbers<[1], [0], [0], [1], [0, 0, 1, 1], [], []>} : vector<2x128xf32>, vector<128x512xf32>, vector<2x512xf32> -> vector<2x512xf32>
    %147 = arith.addf %145, %146 : vector<2x512xf32>
    %148 = vector.extract_strided_slice %147 {offsets = [0, 0], sizes = [2, 384], strides = [1, 1]} : vector<2x512xf32> to vector<2x384xf32>
    %149 = arith.negf %148 : vector<2x384xf32>
    %150 = math.exp %149 : vector<2x384xf32>
    %cst_51 = arith.constant 1.000000e+00 : f32
    %151 = vector.broadcast %cst_51 : f32 to vector<2x384xf32>
    %152 = arith.addf %151, %150 : vector<2x384xf32>
    %153 = arith.divf %151, %152 : vector<2x384xf32>
    %154 = vector.extract_strided_slice %153 {offsets = [0, 0], sizes = [2, 128], strides = [1, 1]} : vector<2x384xf32> to vector<2x128xf32>
    %155 = vector.extract_strided_slice %153 {offsets = [0, 128], sizes = [2, 128], strides = [1, 1]} : vector<2x384xf32> to vector<2x128xf32>
    %156 = vector.extract_strided_slice %153 {offsets = [0, 256], sizes = [2, 128], strides = [1, 1]} : vector<2x384xf32> to vector<2x128xf32>
    %157 = vector.extract_strided_slice %147 {offsets = [0, 384], sizes = [2, 128], strides = [1, 1]} : vector<2x512xf32> to vector<2x128xf32>
    %158 = math.tanh %157 : vector<2x128xf32>
    %159 = arith.mulf %155, %138 : vector<2x128xf32>
    %160 = arith.mulf %154, %158 : vector<2x128xf32>
    %161 = arith.addf %159, %160 : vector<2x128xf32>
    %162 = math.tanh %161 : vector<2x128xf32>
    %163 = arith.mulf %156, %162 : vector<2x128xf32>
    %c0_52 = arith.constant 0 : index
    %c6_53 = arith.constant 6 : index
    %c0_54 = arith.constant 0 : index
    %164 = vector.load %arg5[%c0_52, %c6_53, %c0_54] : memref<2x8x128xf32, #tpu.memory_space<vmem>>, vector<2x1x128xf32>
    %165 = vector.shape_cast %164 : vector<2x1x128xf32> to vector<2x128xf32>
    %166 = vector.shape_cast %163 : vector<2x128xf32> to vector<2x1x128xf32>
    tpu.vector_store %arg5[%c0_52, %c6_53, %c0_54], %166 {strides = array<i32>} : memref<2x8x128xf32, #tpu.memory_space<vmem>>, vector<2x1x128xf32>,
    %c0_55 = arith.constant 0 : index
    %c7 = arith.constant 7 : index
    %c0_56 = arith.constant 0 : index
    %167 = vector.load %arg2[%c0_55, %c7, %c0_56] : memref<2x8x512xf32, #tpu.memory_space<vmem>>, vector<2x1x512xf32>
    %168 = vector.shape_cast %167 : vector<2x1x512xf32> to vector<2x512xf32>
    %cst_57 = arith.constant dense<0.000000e+00> : vector<2x512xf32>
    %169 = tpu.matmul %163, %3, %cst_57 {dimension_numbers = #tpu.dot_dimension_numbers<[1], [0], [0], [1], [0, 0, 1, 1], [], []>} : vector<2x128xf32>, vector<128x512xf32>, vector<2x512xf32> -> vector<2x512xf32>
    %170 = arith.addf %168, %169 : vector<2x512xf32>
    %171 = vector.extract_strided_slice %170 {offsets = [0, 0], sizes = [2, 384], strides = [1, 1]} : vector<2x512xf32> to vector<2x384xf32>
    %172 = arith.negf %171 : vector<2x384xf32>
    %173 = math.exp %172 : vector<2x384xf32>
    %cst_58 = arith.constant 1.000000e+00 : f32
    %174 = vector.broadcast %cst_58 : f32 to vector<2x384xf32>
    %175 = arith.addf %174, %173 : vector<2x384xf32>
    %176 = arith.divf %174, %175 : vector<2x384xf32>
    %177 = vector.extract_strided_slice %176 {offsets = [0, 0], sizes = [2, 128], strides = [1, 1]} : vector<2x384xf32> to vector<2x128xf32>
    %178 = vector.extract_strided_slice %176 {offsets = [0, 128], sizes = [2, 128], strides = [1, 1]} : vector<2x384xf32> to vector<2x128xf32>
    %179 = vector.extract_strided_slice %176 {offsets = [0, 256], sizes = [2, 128], strides = [1, 1]} : vector<2x384xf32> to vector<2x128xf32>
    %180 = vector.extract_strided_slice %170 {offsets = [0, 384], sizes = [2, 128], strides = [1, 1]} : vector<2x512xf32> to vector<2x128xf32>
    %181 = math.tanh %180 : vector<2x128xf32>
    %182 = arith.mulf %178, %161 : vector<2x128xf32>
    %183 = arith.mulf %177, %181 : vector<2x128xf32>
    %184 = arith.addf %182, %183 : vector<2x128xf32>
    %185 = math.tanh %184 : vector<2x128xf32>
    %186 = arith.mulf %179, %185 : vector<2x128xf32>
    %c0_59 = arith.constant 0 : index
    %c7_60 = arith.constant 7 : index
    %c0_61 = arith.constant 0 : index
    %187 = vector.load %arg5[%c0_59, %c7_60, %c0_61] : memref<2x8x128xf32, #tpu.memory_space<vmem>>, vector<2x1x128xf32>
    %188 = vector.shape_cast %187 : vector<2x1x128xf32> to vector<2x128xf32>
    %189 = vector.shape_cast %186 : vector<2x128xf32> to vector<2x1x128xf32>
    tpu.vector_store %arg5[%c0_59, %c7_60, %c0_61], %189 {strides = array<i32>} : memref<2x8x128xf32, #tpu.memory_space<vmem>>, vector<2x1x128xf32>,
    %c0_62 = arith.constant 0 : index
    %c0_63 = arith.constant 0 : index
    %190 = vector.load %arg6[%c0_62, %c0_63] : memref<2x128xf32, #tpu.memory_space<vmem>>, vector<2x128xf32>
    tpu.vector_store %arg6[%c0_62, %c0_63], %186 {strides = array<i32>} : memref<2x128xf32, #tpu.memory_space<vmem>>, vector<2x128xf32>,
    %c0_64 = arith.constant 0 : index
    %c0_65 = arith.constant 0 : index
    %191 = vector.load %arg7[%c0_64, %c0_65] : memref<2x128xf32, #tpu.memory_space<vmem>>, vector<2x128xf32>
    tpu.vector_store %arg7[%c0_64, %c0_65], %184 {strides = array<i32>} : memref<2x128xf32, #tpu.memory_space<vmem>>, vector<2x128xf32>,
    return
  }
  func.func @transform_0(%arg0: i32, %arg1: i32) -> (i32, i32, i32) {
    %c0_i32 = arith.constant 0 : i32
    %c0_i32_0 = arith.constant 0 : i32
    return %arg0, %arg1, %c0_i32 : i32, i32, i32
  }
  func.func @transform_1(%arg0: i32, %arg1: i32) -> (i32, i32) {
    %c0_i32 = arith.constant 0 : i32
    %c0_i32_0 = arith.constant 0 : i32
    return %arg0, %c0_i32 : i32, i32
  }
  func.func @transform_2(%arg0: i32, %arg1: i32) -> (i32, i32) {
    %c0_i32 = arith.constant 0 : i32
    %c0_i32_0 = arith.constant 0 : i32
    %c0_i32_1 = arith.constant 0 : i32
    return %c0_i32, %c0_i32_0 : i32, i32
  }
  func.func @transform_3(%arg0: i32, %arg1: i32) -> (i32, i32, i32) {
    %c0_i32 = arith.constant 0 : i32
    %c0_i32_0 = arith.constant 0 : i32
    return %arg0, %arg1, %c0_i32 : i32, i32, i32
  }
}

</mosaic_0001>

<bundles_post_ra>
// kernel: tpu_custom_call.1
= control target key start
LH: loop header
LB: loop body
LE: loop exit
PB: predicated region body
PF: predicated region fallthrough
CT: control target
= control target key end

     0   :  { %8 = vsyncpa [#allocation5], 0  ;;  %s3391_s0 = inlined_call_operand.hbm [shape: f32[2,8,512], index: 0, kind: input, shape index: {}]   ;;  %s3392_s1 = inlined_call_operand.vmem [shape: f32[2,128], index: 1, kind: input, shape index: {}]   ;;  %s3393_s2 = inlined_call_operand.hbm [shape: f32[128,512], index: 2, kind: input, shape index: {}]   ;;  %s3394_s3 = inlined_call_operand.hbm [shape: f32[2,8,128], index: 3, kind: output, shape index: {}]  }
   0x1   :  { %9 = vsyncpa [#allocation8], 0 }
   0x2   :  { %10 = vsyncpa [#allocation6], 0  ;;  %s2886_s12 = smov [#allocation4]   ;;  %s2814_s16 = scalar_lea.hbm %s3391_s0, 1024 }
   0x3   :  { %s16_s13 = sshll.u32 %s2886_s12, 4  ;;  %p2815_p0 = scmp.ne.s32.totalorder %s3391_s0, %s2814_s16  ;;  %s17_s13 = int_to_ptr.vmem [resolvable:$true] %s16_s13 }
   0x4   :  { %p2818_p1 = scmp.lt.u32.totalorder %s2814_s16, %s3391_s0 }
   0x6   :  { %p2820_p2 = pnand %p2818_p1, %p2815_p0 }
   0x8   :  { %2823 = shalt.err (!%p2820_p2)
}
   0x9   :  { %s2824_s21 = scalar_lea.vmem %s17_s13, 1024  ;;  %p2829_p4 = scmp.lt.s32.totalorder %s17_s13, %s17_s13 }
   0xa   :  { %p2825_p3 = scmp.ne.s32.totalorder %s17_s13, %s2824_s21  ;;  %p2830_p5 = scmp.lt.s32.totalorder %s2824_s21, %s2824_s21 }
   0xc   :  { %p2831_p6 = por %p2830_p5, %p2829_p4 }
   0xe   :  { %p2832_p7 = pnand %p2831_p6, %p2825_p3 }
  0x10   :  { %2835 = shalt.err (!%p2832_p7)
}
  0x11   :  { %s2887_s22 = smov 512   ;;  %s2888_s23 = smov 32  }
  0x12   :  { %22 = dma.hbm_to_vmem [thread:$0]  %s3391_s0, 1024, %s17_s13, [#allocation5], %s2887_s22, %s2887_s22, %s2888_s23  }
  0x13   :  { %s2889_s26 = smov [#allocation7]   ;;  %s2836_s30 = scalar_lea.hbm %s3393_s2, 8192 }
  0x14   :  { %s30_s27 = sshll.u32 %s2889_s26, 4  ;;  %p2837_p8 = scmp.ne.s32.totalorder %s3393_s2, %s2836_s30  ;;  %s31_s27 = int_to_ptr.vmem [resolvable:$true] %s30_s27 }
  0x15   :  { %p2840_p9 = scmp.lt.u32.totalorder %s2836_s30, %s3393_s2 }
  0x17   :  { %p2842_p10 = pnand %p2840_p9, %p2837_p8 }
  0x19   :  { %2845 = shalt.err (!%p2842_p10)
}
  0x1a   :  { %s2846_s8 = scalar_lea.vmem %s31_s27, 8192  ;;  %p2851_p12 = scmp.lt.s32.totalorder %s31_s27, %s31_s27 }
  0x1b   :  { %p2847_p11 = scmp.ne.s32.totalorder %s31_s27, %s2846_s8  ;;  %p2852_p13 = scmp.lt.s32.totalorder %s2846_s8, %s2846_s8 }
  0x1d   :  { %p2853_p0 = por %p2852_p13, %p2851_p12 }
  0x1f   :  { %p2854_p1 = pnand %p2853_p0, %p2847_p11 }
  0x21   :  { %2857 = shalt.err (!%p2854_p1)
}
  0x22   :  { %36 = dma.hbm_to_vmem [thread:$0]  %s3393_s2, 8192, %s31_s27, [#allocation8], %s2887_s22, %s2887_s22, %s2888_s23  }
  0x23   :  { %2880 = dma.done.wait [#allocation5], 1024  }
  0x24   :  { %2881 = vsyncadd [#allocation5], 4294966272 }
  0x25   :  { %2882 = dma.done.wait [#allocation8], 8192  }
  0x26   :  { %2883 = vsyncadd [#allocation8], 4294959104  ;;  %v2890_v0 = vmov 0.0   ;;  %v51_v1 = vld [vmem:[#allocation7 + $0x8] sm:$0xff]  ;;  %v53_v3 = vld [vmem:[#allocation7 + $0x18] sm:$0xff] }
  0x27   :  { %183 = vmatprep.mubr.f32.mxu0 %v2890_v0  ;;  %49 = vst [vmem:[#allocation3] sm:$0x3] %v2890_v0  ;;  %254 = vmatprep.mubr.f32.mxu1 %v2890_v0  ;;  %v55_v2 = vld [vmem:[#allocation7 + $0x28] sm:$0xff]  ;;  %v57_v5 = vld [vmem:[#allocation7 + $0x38] sm:$0xff]  ;;  %v50_v6 = vld [vmem:[#allocation7] sm:$0xff] }
  0x28   :  { %v2942_v4 = vpack.c.bf16 %v55_v2, %v51_v1  ;;  %v54_v7 = vld [vmem:[#allocation7 + $0x20] sm:$0xff]  ;;  %v2944_v8 = vpack.c.bf16 %v57_v5, %v53_v3  ;;  %v52_v10 = vld [vmem:[#allocation7 + $0x10] sm:$0xff]  ;;  %v59_v12 = vld [vmem:[#allocation7 + $0x48] sm:$0xff] }
  0x29   :  { %v2946_v9 = vpack.c.bf16 %v54_v7, %v50_v6  ;;  %v56_v11 = vld [vmem:[#allocation7 + $0x30] sm:$0xff]  ;;  %v63_v14 = vld [vmem:[#allocation7 + $0x68] sm:$0xff]  ;;  %v61_v15 = vld [vmem:[#allocation7 + $0x58] sm:$0xff] }
  0x2a   :  { %2166 = vmatprep.subr.bf16.mxu0 %v2942_v4  ;;  %v2949_v13 = vpack.c.bf16 %v56_v11, %v52_v10  ;;  %v65_v16 = vld [vmem:[#allocation7 + $0x78] sm:$0xff]  ;;  %2198 = vmatprep.subr.bf16.mxu1 %v2944_v8  ;;  %v2953_v17 = vpack.c.bf16 %v63_v14, %v59_v12  ;;  %v58_v19 = vld [vmem:[#allocation7 + $0x40] sm:$0xff]  ;;  %v60_v21 = vld [vmem:[#allocation7 + $0x50] sm:$0xff] }
  0x2b   :  { %2168 = vmatpush1.bf16.msra.mxu0 %v2946_v9  ;;  %v2955_v18 = vpack.c.bf16 %v65_v16, %v61_v15  ;;  %v62_v20 = vld [vmem:[#allocation7 + $0x60] sm:$0xff]  ;;  %v64_v23 = vld [vmem:[#allocation7 + $0x70] sm:$0xff]  ;;  %v67_v24 = vld [vmem:[#allocation7 + $0x88] sm:$0xff] }
  0x2c   :  { %2200 = vmatpush1.bf16.msra.mxu1 %v2949_v13  ;;  %v2958_v22 = vpack.c.bf16 %v62_v20, %v58_v19  ;;  %v71_v25 = vld [vmem:[#allocation7 + $0xa8] sm:$0xff]  ;;  %2170 = vmatprep.subr.bf16.mxu0 %v2953_v17  ;;  %v2962_v26 = vpack.c.bf16 %v64_v23, %v60_v21  ;;  %v69_v28 = vld [vmem:[#allocation7 + $0x98] sm:$0xff]  ;;  %v66_v30 = vld [vmem:[#allocation7 + $0x80] sm:$0xff] }
  0x2d   :  { %2202 = vmatprep.subr.bf16.mxu1 %v2955_v18  ;;  %v2964_v27 = vpack.c.bf16 %v71_v25, %v67_v24  ;;  %v73_v29 = vld [vmem:[#allocation7 + $0xb8] sm:$0xff]  ;;  %v70_v32 = vld [vmem:[#allocation7 + $0xa0] sm:$0xff]  ;;  %v68_v33 = vld [vmem:[#allocation7 + $0x90] sm:$0xff] }
  0x2e   :  { %v2966_v31 = vpack.c.bf16 %v73_v29, %v69_v28  ;;  %v72_v34 = vld [vmem:[#allocation7 + $0xb0] sm:$0xff]  ;;  %v2969_v35 = vpack.c.bf16 %v70_v32, %v66_v30  ;;  %v75_v36 = vld [vmem:[#allocation7 + $0xc8] sm:$0xff]  ;;  %v77_v38 = vld [vmem:[#allocation7 + $0xd8] sm:$0xff] }
  0x2f   :  { %2172 = vmatpush1.bf16.msra.mxu0 %v2958_v22  ;;  %v79_v37 = vld [vmem:[#allocation7 + $0xe8] sm:$0xff]  ;;  %v2973_v39 = vpack.c.bf16 %v72_v34, %v68_v33  ;;  %v81_v41 = vld [vmem:[#allocation7 + $0xf8] sm:$0xff]  ;;  %v74_v42 = vld [vmem:[#allocation7 + $0xc0] sm:$0xff] }
  0x30   :  { %2204 = vmatpush1.bf16.msra.mxu1 %v2962_v26  ;;  %2174 = vmatprep.subr.bf16.mxu0 %v2964_v27  ;;  %v2975_v40 = vpack.c.bf16 %v79_v37, %v75_v36  ;;  %v78_v43 = vld [vmem:[#allocation7 + $0xe0] sm:$0xff]  ;;  %v2978_v44 = vpack.c.bf16 %v81_v41, %v77_v38  ;;  %v76_v45 = vld [vmem:[#allocation7 + $0xd0] sm:$0xff]  ;;  %v83_v47 = vld [vmem:[#allocation7 + $0x108] sm:$0xff] }
  0x31   :  { %2206 = vmatprep.subr.bf16.mxu1 %v2966_v31  ;;  %v80_v46 = vld [vmem:[#allocation7 + $0xf0] sm:$0xff]  ;;  %v87_v48 = vld [vmem:[#allocation7 + $0x128] sm:$0xff]  ;;  %v85_v49 = vld [vmem:[#allocation7 + $0x118] sm:$0xff]  ;;  %v2981_v51 = vpack.c.bf16 %v78_v43, %v74_v42 }
  0x32   :  { %v89_v50 = vld [vmem:[#allocation7 + $0x138] sm:$0xff]  ;;  %v2985_v52 = vpack.c.bf16 %v80_v46, %v76_v45  ;;  %v2987_v53 = vpack.c.bf16 %v87_v48, %v83_v47  ;;  %v82_v54 = vld [vmem:[#allocation7 + $0x100] sm:$0xff]  ;;  %v84_v56 = vld [vmem:[#allocation7 + $0x110] sm:$0xff] }
  0x33   :  { %2176 = vmatpush1.bf16.msra.mxu0 %v2969_v35  ;;  %v86_v55 = vld [vmem:[#allocation7 + $0x120] sm:$0xff]  ;;  %v2990_v57 = vpack.c.bf16 %v89_v50, %v85_v49  ;;  %v88_v58 = vld [vmem:[#allocation7 + $0x130] sm:$0xff]  ;;  %v91_v59 = vld [vmem:[#allocation7 + $0x148] sm:$0xff]  ;;  %v2891_v50 = vmov 1966171168  }
  0x34   :  { %2208 = vmatpush1.bf16.msra.mxu1 %v2973_v39  ;;  %2178 = vmatprep.subr.bf16.mxu0 %v2975_v40  ;;  %v95_v60 = vld [vmem:[#allocation7 + $0x168] sm:$0xff]  ;;  %v93_v61 = vld [vmem:[#allocation7 + $0x158] sm:$0xff]  ;;  %v2993_v63 = vpack.c.bf16 %v86_v55, %v82_v54  ;;  %v2997_v1 = vpack.c.bf16 %v88_v58, %v84_v56  ;;  %v90_v3 = vld [vmem:[#allocation7 + $0x140] sm:$0xff]  ;;  %v268_v54 = vunpack.c.l.s4 %v2891_v50  ;;  %v270_v55 = vlaneseq }
  0x35   :  { %2210 = vmatprep.subr.bf16.mxu1 %v2978_v44  ;;  %v97_v62 = vld [vmem:[#allocation7 + $0x178] sm:$0xff]  ;;  %v2999_v2 = vpack.c.bf16 %v95_v60, %v91_v59  ;;  %v94_v5 = vld [vmem:[#allocation7 + $0x160] sm:$0xff]  ;;  %v92_v6 = vld [vmem:[#allocation7 + $0x150] sm:$0xff] }
  0x36   :  { %v3002_v7 = vpack.c.bf16 %v97_v62, %v93_v61  ;;  %v96_v10 = vld [vmem:[#allocation7 + $0x170] sm:$0xff]  ;;  %v99_v11 = vld [vmem:[#allocation7 + $0x188] sm:$0xff]  ;;  %v101_v14 = vld [vmem:[#allocation7 + $0x198] sm:$0xff]  ;;  %v3005_v16 = vpack.c.bf16 %v94_v5, %v90_v3  ;;  %v269_v56 = vunpack.c.0.s8 %v268_v54  ;;  %v271_v58 = vshrl.u32 %v270_v55, 7 }
  0x37   :  { %2180 = vmatpush1.bf16.msra.mxu0 %v2981_v51  ;;  %v103_v12 = vld [vmem:[#allocation7 + $0x1a8] sm:$0xff]  ;;  %v105_v15 = vld [vmem:[#allocation7 + $0x1b8] sm:$0xff]  ;;  %v98_v19 = vld [vmem:[#allocation7 + $0x180] sm:$0xff]  ;;  %v3009_v20 = vpack.c.bf16 %v96_v10, %v92_v6 }
  0x38   :  { %2212 = vmatpush1.bf16.msra.mxu1 %v2985_v52  ;;  %2182 = vmatprep.subr.bf16.mxu0 %v2987_v53  ;;  %v3011_v21 = vpack.c.bf16 %v103_v12, %v99_v11  ;;  %v102_v23 = vld [vmem:[#allocation7 + $0x1a0] sm:$0xff]  ;;  %v100_v24 = vld [vmem:[#allocation7 + $0x190] sm:$0xff]  ;;  %v47_v25 = vld [vmem:[%s3392_s1] sm:$0x3]  ;;  %v3017_v28 = vpack.c.bf16 %v105_v15, %v101_v14  ;;  %v3077_v60 = vsub.s32 %v269_v56, %v271_v58  ;;  %s2892_s1 = smov [#allocation9]  }
  0x39   :  { %2214 = vmatprep.subr.bf16.mxu1 %v2990_v57  ;;  %v104_v29 = vld [vmem:[#allocation7 + $0x1b0] sm:$0xff]  ;;  %v107_v30 = vld [vmem:[#allocation7 + $0x1c8] sm:$0xff]  ;;  %48 = vst [vmem:[#allocation2] sm:$0x3] %v47_v25  ;;  %v109_v33 = vld [vmem:[#allocation7 + $0x1d8] sm:$0xff]  ;;  %v3020_v36 = vpack.c.bf16 %v102_v23, %v98_v19  ;;  %s2133_s11 = sshll.u32 %s2892_s1, 4  ;;  %s2134_s11 = int_to_ptr.vmem [resolvable:$true] %s2133_s11 }
  0x3a   :  { %v111_v32 = vld [vmem:[#allocation7 + $0x1e8] sm:$0xff]  ;;  %v113_v34 = vld [vmem:[#allocation7 + $0x1f8] sm:$0xff]  ;;  %v3024_v37 = vpack.c.bf16 %v104_v29, %v100_v24  ;;  %v106_v41 = vld [vmem:[#allocation7 + $0x1c0] sm:$0xff]  ;;  %s2858_s12 = scalar_lea.vmem %s2134_s11, 256  ;;  %p2863_p3 = scmp.lt.s32.totalorder %s2134_s11, %s2134_s11 }
  0x3b   :  { %2184 = vmatpush1.bf16.msra.mxu0 %v2993_v63  ;;  %v3026_v38 = vpack.c.bf16 %v111_v32, %v107_v30  ;;  %v110_v42 = vld [vmem:[#allocation7 + $0x1e0] sm:$0xff]  ;;  %v3029_v43 = vpack.c.bf16 %v113_v34, %v109_v33  ;;  %v108_v45 = vld [vmem:[#allocation7 + $0x1d0] sm:$0xff]  ;;  %p2859_p2 = scmp.ne.s32.totalorder %s2134_s11, %s2858_s12  ;;  %p2864_p4 = scmp.lt.s32.totalorder %s2858_s12, %s2858_s12 }
  0x3c   :  { %2216 = vmatpush1.bf16.msra.mxu1 %v2997_v1  ;;  %2186 = vmatprep.subr.bf16.mxu0 %v2999_v2  ;;  %v112_v46 = vld [vmem:[#allocation7 + $0x1f0] sm:$0xff]  ;;  %v3032_v47 = vpack.c.bf16 %v110_v42, %v106_v41 }
  0x3d   :  { %2218 = vmatprep.subr.bf16.mxu1 %v3002_v7  ;;  %v3036_v48 = vpack.c.bf16 %v112_v46, %v108_v45  ;;  %v116_v15 = vld [vmem:[#allocation4] ss:$8 sm:$0xf]  ;;  %p2865_p5 = por %p2864_p4, %p2863_p3 }
  0x3e   :  { %v118_v19 = vld [vmem:[#allocation4 + $0x20] ss:$8 sm:$0xf] }
  0x3f   :  { %2188 = vmatpush1.bf16.msra.mxu0 %v3005_v16  ;;  %p2866_p6 = pnand %p2865_p5, %p2859_p2 }
  0x40   :  { %2220 = vmatpush1.bf16.msra.mxu1 %v3009_v20  ;;  %2190 = vmatprep.subr.bf16.mxu0 %v3011_v21  ;;  %v114_v49 = vld [vmem:[#allocation2] sm:$0x3] }
  0x41   :  { %2222 = vmatprep.subr.bf16.mxu1 %v3017_v28 }
  0x43   :  { %2192 = vmatpush1.bf16.msra.mxu0 %v3020_v36 }
  0x44   :  { %2224 = vmatpush1.bf16.msra.mxu1 %v3024_v37  ;;  %2194 = vmatprep.subr.bf16.mxu0 %v3026_v38 }
  0x45   :  { %2226 = vmatprep.subr.bf16.mxu1 %v3029_v43 }
  0x47   :  { %2196 = vmatpush1.bf16.msra.mxu0 %v3032_v47 }
  0x48   :  { %2228 = vmatpush1.bf16.msra.mxu1 %v3036_v48  ;;  %2230 = vmatprep.subr.bf16.mxu0 %v2942_v4 }
  0x49   :  { %2262 = vmatprep.subr.bf16.mxu1 %v2944_v8 }
  0x4a   :  { %184 = vmatmul.mubr.f32.vlgmr.msra.gmra.mrb[0].mxu0 %v114_v49 }
  0x4b   :  { %255 = vmatmul.mubr.f32.vlgmr.msra.gmra.mrb[0].mxu1 %v114_v49  ;;  %2232 = vmatpush1.bf16.msra.mxu0 %v2946_v9  ;;  %v2148_v49 = vld.sshfl [vmem:[#allocation3] sm:$0x11 pattern:$0x75316420] }
  0x4c   :  { %2264 = vmatpush1.bf16.msra.mxu1 %v2949_v13  ;;  %2234 = vmatprep.subr.bf16.mxu0 %v2953_v17  ;;  %v335_v50 = vcombine.high %v2148_v49, %v2148_v49  ;;  %v342_v54 = vrot.slane %v2148_v49, %v3077_v60 }
  0x4d   :  { %2266 = vmatprep.subr.bf16.mxu1 %v2955_v18  ;;  %454 = vmatprep.mubr.f32.mxu0 %v2890_v0 }
  0x4e   :  { %525 = vmatprep.mubr.f32.mxu1 %v2890_v0  ;;  %v349_v56 = vrot.slane %v335_v50, %v3077_v60 }
  0x4f   :  { %2236 = vmatpush1.bf16.msra.mxu0 %v2958_v22 }
  0x50   :  { %2268 = vmatpush1.bf16.msra.mxu1 %v2962_v26  ;;  %2238 = vmatprep.subr.bf16.mxu0 %v2964_v27 }
  0x51   :  { %2270 = vmatprep.subr.bf16.mxu1 %v2966_v31 }
  0x53   :  { %2240 = vmatpush1.bf16.msra.mxu0 %v2969_v35 }
  0x54   :  { %2272 = vmatpush1.bf16.msra.mxu1 %v2973_v39  ;;  %2242 = vmatprep.subr.bf16.mxu0 %v2975_v40 }
  0x55   :  { %2274 = vmatprep.subr.bf16.mxu1 %v2978_v44 }
  0x57   :  { %2244 = vmatpush1.bf16.msra.mxu0 %v2981_v51 }
  0x58   :  { %2276 = vmatpush1.bf16.msra.mxu1 %v2985_v52  ;;  %2246 = vmatprep.subr.bf16.mxu0 %v2987_v53 }
  0x59   :  { %2278 = vmatprep.subr.bf16.mxu1 %v2990_v57 }
  0x5b   :  { %2248 = vmatpush1.bf16.msra.mxu0 %v2993_v63 }
  0x5c   :  { %2280 = vmatpush1.bf16.msra.mxu1 %v2997_v1  ;;  %2250 = vmatprep.subr.bf16.mxu0 %v2999_v2 }
  0x5d   :  { %2282 = vmatprep.subr.bf16.mxu1 %v3002_v7 }
  0x5f   :  { %2252 = vmatpush1.bf16.msra.mxu0 %v3005_v16 }
  0x60   :  { %2284 = vmatpush1.bf16.msra.mxu1 %v3009_v20  ;;  %2254 = vmatprep.subr.bf16.mxu0 %v3011_v21 }
  0x61   :  { %2286 = vmatprep.subr.bf16.mxu1 %v3017_v28 }
  0x63   :  { %2256 = vmatpush1.bf16.msra.mxu0 %v3020_v36 }
  0x64   :  { %2288 = vmatpush1.bf16.msra.mxu1 %v3024_v37  ;;  %2258 = vmatprep.subr.bf16.mxu0 %v3026_v38 }
  0x65   :  { %2290 = vmatprep.subr.bf16.mxu1 %v3029_v43 }
  0x67   :  { %2260 = vmatpush1.bf16.msra.mxu0 %v3032_v47 }
  0x68   :  { %2292 = vmatpush1.bf16.msra.mxu1 %v3036_v48  ;;  %2294 = vmatprep.subr.bf16.mxu0 %v2942_v4 }
  0x69   :  { %2326 = vmatprep.subr.bf16.mxu1 %v2944_v8 }
 0x11d   :  { %v185_v59 = vpop.f32.mrb[0].mxu0 }
 0x11e   :  { %v256_v61 = vpop.f32.mrb[0].mxu1  ;;  %v187_v62 = vpop.f32.mrb[1].mxu0 }
 0x11f   :  { %v265_v3 = vcombine.low %v185_v59, %v187_v62  ;;  %v258_v5 = vpop.f32.mrb[1].mxu1 }
 0x120   :  { %v266_v6 = vcombine.low %v256_v61, %v258_v5 }
 0x121   :  { %v273_v10 = vrot.slane %v265_v3, %v3077_v60 }
 0x122   :  { %v280_v11 = vrot.slane %v266_v6, %v3077_v60 }
 0x124   :  { %v281_v12 = vcombine.low %v273_v10, %v280_v11  ;;  %v282_v14 = vcombine.high %v273_v10, %v280_v11 }
 0x126   :  { %v289_v23 = vrot.slane %v281_v12, %v3077_v60  ;;  %v296_v24 = vrot.slane %v282_v14, %v3077_v60 }
 0x128   :  { %v299_v25 = vadd.f32 %v289_v23, %v116_v15  ;;  %v300_v29 = vadd.f32 %v296_v24, %v118_v19 }
 0x12a   :  { %v2146_v30 = vmul.f32 -1.442695, %v299_v25  ;;  %v2147_v32 = vmul.f32 -1.442695, %v300_v29  ;;  %v315_v42 = vrot.slane %v299_v25, 3  ;;  %v316_v46 = vrot.slane %v300_v29, 3 }
 0x12c   :  { %2686 = vpow2.f32 %v2146_v30 }
 0x12d   :  { %2688 = vpow2.f32 %v2147_v32 }
 0x136   :  { %v2687_v33 = vpop.eup %2686 }
 0x137   :  { %v2689_v34 = vpop.eup %2688  ;;  %v307_v41 = vadd.f32 1.0, %v2687_v33 }
 0x138   :  { %v308_v45 = vadd.f32 1.0, %v2689_v34 }
 0x139   :  { %2690 = vrcp.f32 %v307_v41 }
 0x13a   :  { %2692 = vrcp.f32 %v308_v45 }
 0x13b   :  { %2694 = vtanh.f32 %v315_v42 }
 0x13c   :  { %2696 = vtanh.f32 %v316_v46 }
 0x143   :  { %v2691_v55 = vpop.eup %2690 }
 0x144   :  { %v2693_v58 = vpop.eup %2692  ;;  %v323_v59 = vrot.slane %v2691_v55, 1  ;;  %v360_v15 = vrot.slane %v2691_v55, 2 }
 0x145   :  { %v2695_v61 = vpop.eup %2694  ;;  %v324_v62 = vrot.slane %v2693_v58, 1  ;;  %v361_v23 = vrot.slane %v2693_v58, 2 }
 0x146   :  { %v2697_v3 = vpop.eup %2696  ;;  %v352_v5 = vmul.f32 %v342_v54, %v323_v59  ;;  %v354_v6 = vmul.f32 %v2695_v61, %v2691_v55  ;;  %v371_v59 = vld [vmem:[#allocation4 + $0x21] ss:$8 sm:$0xf] }
 0x147   :  { %v353_v10 = vmul.f32 %v349_v56, %v324_v62  ;;  %v355_v11 = vmul.f32 %v2697_v3, %v2693_v58  ;;  %v369_v58 = vld [vmem:[#allocation4 + $0x1] ss:$8 sm:$0xf] }
 0x148   :  { %v3085_v12 = vadd.f32 %v354_v6, %v352_v5 }
 0x149   :  { %v3087_v14 = vadd.f32 %v355_v11, %v353_v10 }
 0x14a   :  { %2698 = vtanh.f32 %v3085_v12 }
 0x14b   :  { %2700 = vtanh.f32 %v3087_v14 }
 0x154   :  { %v2699_v19 = vpop.eup %2698 }
 0x155   :  { %v2701_v24 = vpop.eup %2700  ;;  %v364_v25 = vmul.f32 %v2699_v19, %v360_v15 }
 0x156   :  { %v365_v29 = vmul.f32 %v2701_v24, %v361_v23 }
 0x157   :  { %366 = vst [vmem:[#allocation9] sm:$0x1] %v364_v25 }
 0x158   :  { %367 = vst [vmem:[#allocation9 + $0x8] sm:$0x1] %v365_v29  ;;  %v374_v30 = vcombine.low %v364_v25, %v365_v29 }
 0x15a   :  { %v381_v32 = vrot.slane %v374_v30, %v3077_v60 }
 0x15c   :  { %v388_v33 = vrot.slane %v381_v32, %v3077_v60 }
 0x15e   :  { %455 = vmatmul.mubr.f32.vlgmr.msra.gmra.mrb[2].mxu0 %v388_v33  ;;  %526 = vmatmul.mubr.f32.vlgmr.msra.gmra.mrb[2].mxu1 %v388_v33 }
 0x15f   :  { %2296 = vmatpush1.bf16.msra.mxu0 %v2946_v9  ;;  %2328 = vmatpush1.bf16.msra.mxu1 %v2949_v13 }
 0x160   :  { %2298 = vmatprep.subr.bf16.mxu0 %v2953_v17  ;;  %2330 = vmatprep.subr.bf16.mxu1 %v2955_v18 }
 0x161   :  { %700 = vmatprep.mubr.f32.mxu0 %v2890_v0  ;;  %771 = vmatprep.mubr.f32.mxu1 %v2890_v0 }
 0x163   :  { %2300 = vmatpush1.bf16.msra.mxu0 %v2958_v22  ;;  %2332 = vmatpush1.bf16.msra.mxu1 %v2962_v26 }
 0x164   :  { %2302 = vmatprep.subr.bf16.mxu0 %v2964_v27  ;;  %2334 = vmatprep.subr.bf16.mxu1 %v2966_v31 }
 0x167   :  { %2304 = vmatpush1.bf16.msra.mxu0 %v2969_v35  ;;  %2336 = vmatpush1.bf16.msra.mxu1 %v2973_v39 }
 0x168   :  { %2306 = vmatprep.subr.bf16.mxu0 %v2975_v40  ;;  %2338 = vmatprep.subr.bf16.mxu1 %v2978_v44 }
 0x16b   :  { %2308 = vmatpush1.bf16.msra.mxu0 %v2981_v51  ;;  %2340 = vmatpush1.bf16.msra.mxu1 %v2985_v52 }
 0x16c   :  { %2310 = vmatprep.subr.bf16.mxu0 %v2987_v53  ;;  %2342 = vmatprep.subr.bf16.mxu1 %v2990_v57 }
 0x16f   :  { %2312 = vmatpush1.bf16.msra.mxu0 %v2993_v63  ;;  %2344 = vmatpush1.bf16.msra.mxu1 %v2997_v1 }
 0x170   :  { %2314 = vmatprep.subr.bf16.mxu0 %v2999_v2  ;;  %2346 = vmatprep.subr.bf16.mxu1 %v3002_v7 }
 0x173   :  { %2316 = vmatpush1.bf16.msra.mxu0 %v3005_v16  ;;  %2348 = vmatpush1.bf16.msra.mxu1 %v3009_v20 }
 0x174   :  { %2318 = vmatprep.subr.bf16.mxu0 %v3011_v21  ;;  %2350 = vmatprep.subr.bf16.mxu1 %v3017_v28 }
 0x177   :  { %2320 = vmatpush1.bf16.msra.mxu0 %v3020_v36  ;;  %2352 = vmatpush1.bf16.msra.mxu1 %v3024_v37 }
 0x178   :  { %2322 = vmatprep.subr.bf16.mxu0 %v3026_v38  ;;  %2354 = vmatprep.subr.bf16.mxu1 %v3029_v43 }
 0x17b   :  { %2324 = vmatpush1.bf16.msra.mxu0 %v3032_v47  ;;  %2356 = vmatpush1.bf16.msra.mxu1 %v3036_v48 }
 0x17c   :  { %2358 = vmatprep.subr.bf16.mxu0 %v2942_v4  ;;  %2390 = vmatprep.subr.bf16.mxu1 %v2944_v8 }
 0x231   :  { %v456_v34 = vpop.f32.mrb[2].mxu0  ;;  %v527_v41 = vpop.f32.mrb[2].mxu1 }
 0x232   :  { %v458_v42 = vpop.f32.mrb[3].mxu0  ;;  %v529_v45 = vpop.f32.mrb[3].mxu1 }
 0x233   :  { %v536_v46 = vcombine.low %v456_v34, %v458_v42  ;;  %v537_v49 = vcombine.low %v527_v41, %v529_v45 }
 0x235   :  { %v544_v50 = vrot.slane %v536_v46, %v3077_v60  ;;  %v551_v54 = vrot.slane %v537_v49, %v3077_v60 }
 0x237   :  { %v552_v55 = vcombine.low %v544_v50, %v551_v54  ;;  %v553_v56 = vcombine.high %v544_v50, %v551_v54 }
 0x239   :  { %v560_v61 = vrot.slane %v552_v55, %v3077_v60  ;;  %v567_v62 = vrot.slane %v553_v56, %v3077_v60 }
 0x23b   :  { %v570_v3 = vadd.f32 %v560_v61, %v369_v58  ;;  %v571_v5 = vadd.f32 %v567_v62, %v371_v59 }
 0x23d   :  { %v2149_v6 = vmul.f32 -1.442695, %v570_v3  ;;  %v2150_v10 = vmul.f32 -1.442695, %v571_v5  ;;  %v586_v23 = vrot.slane %v570_v3, 3  ;;  %v587_v25 = vrot.slane %v571_v5, 3 }
 0x23f   :  { %2702 = vpow2.f32 %v2149_v6 }
 0x240   :  { %2704 = vpow2.f32 %v2150_v10 }
 0x249   :  { %v2703_v11 = vpop.eup %2702 }
 0x24a   :  { %v2705_v15 = vpop.eup %2704  ;;  %v578_v19 = vadd.f32 1.0, %v2703_v11 }
 0x24b   :  { %v579_v24 = vadd.f32 1.0, %v2705_v15 }
 0x24c   :  { %2706 = vrcp.f32 %v578_v19 }
 0x24d   :  { %2708 = vrcp.f32 %v579_v24 }
 0x24e   :  { %2710 = vtanh.f32 %v586_v23 }
 0x24f   :  { %2712 = vtanh.f32 %v587_v25 }
 0x256   :  { %v2707_v29 = vpop.eup %2706 }
 0x257   :  { %v2709_v30 = vpop.eup %2708  ;;  %v594_v32 = vrot.slane %v2707_v29, 1  ;;  %v606_v55 = vrot.slane %v2707_v29, 2 }
 0x258   :  { %v2711_v33 = vpop.eup %2710  ;;  %v595_v34 = vrot.slane %v2709_v30, 1  ;;  %v607_v58 = vrot.slane %v2709_v30, 2 }
 0x259   :  { %v2713_v41 = vpop.eup %2712  ;;  %v598_v42 = vmul.f32 %v594_v32, %v3085_v12  ;;  %v600_v45 = vmul.f32 %v2711_v33, %v2707_v29  ;;  %v617_v32 = vld [vmem:[#allocation4 + $0x22] ss:$8 sm:$0xf] }
 0x25a   :  { %v599_v46 = vmul.f32 %v595_v34, %v3087_v14  ;;  %v601_v49 = vmul.f32 %v2713_v41, %v2709_v30  ;;  %v615_v30 = vld [vmem:[#allocation4 + $0x2] ss:$8 sm:$0xf] }
 0x25b   :  { %v3133_v50 = vadd.f32 %v600_v45, %v598_v42 }
 0x25c   :  { %v3135_v54 = vadd.f32 %v601_v49, %v599_v46 }
 0x25d   :  { %2714 = vtanh.f32 %v3133_v50 }
 0x25e   :  { %2716 = vtanh.f32 %v3135_v54 }
 0x267   :  { %v2715_v56 = vpop.eup %2714 }
 0x268   :  { %v2717_v59 = vpop.eup %2716  ;;  %v610_v61 = vmul.f32 %v2715_v56, %v606_v55 }
 0x269   :  { %v611_v62 = vmul.f32 %v2717_v59, %v607_v58 }
 0x26a   :  { %612 = vst [vmem:[#allocation9 + $0x1] sm:$0x1] %v610_v61 }
 0x26b   :  { %613 = vst [vmem:[#allocation9 + $0x9] sm:$0x1] %v611_v62  ;;  %v620_v12 = vcombine.low %v610_v61, %v611_v62 }
 0x26d   :  { %v627_v14 = vrot.slane %v620_v12, %v3077_v60 }
 0x26f   :  { %v634_v3 = vrot.slane %v627_v14, %v3077_v60 }
 0x271   :  { %701 = vmatmul.mubr.f32.vlgmr.msra.gmra.mrb[4].mxu0 %v634_v3  ;;  %772 = vmatmul.mubr.f32.vlgmr.msra.gmra.mrb[4].mxu1 %v634_v3 }
 0x272   :  { %2360 = vmatpush1.bf16.msra.mxu0 %v2946_v9  ;;  %2392 = vmatpush1.bf16.msra.mxu1 %v2949_v13 }
 0x273   :  { %2362 = vmatprep.subr.bf16.mxu0 %v2953_v17  ;;  %2394 = vmatprep.subr.bf16.mxu1 %v2955_v18 }
 0x274   :  { %946 = vmatprep.mubr.f32.mxu0 %v2890_v0  ;;  %1017 = vmatprep.mubr.f32.mxu1 %v2890_v0 }
 0x276   :  { %2364 = vmatpush1.bf16.msra.mxu0 %v2958_v22  ;;  %2396 = vmatpush1.bf16.msra.mxu1 %v2962_v26 }
 0x277   :  { %2366 = vmatprep.subr.bf16.mxu0 %v2964_v27  ;;  %2398 = vmatprep.subr.bf16.mxu1 %v2966_v31 }
 0x27a   :  { %2368 = vmatpush1.bf16.msra.mxu0 %v2969_v35  ;;  %2400 = vmatpush1.bf16.msra.mxu1 %v2973_v39 }
 0x27b   :  { %2370 = vmatprep.subr.bf16.mxu0 %v2975_v40  ;;  %2402 = vmatprep.subr.bf16.mxu1 %v2978_v44 }
 0x27e   :  { %2372 = vmatpush1.bf16.msra.mxu0 %v2981_v51  ;;  %2404 = vmatpush1.bf16.msra.mxu1 %v2985_v52 }
 0x27f   :  { %2374 = vmatprep.subr.bf16.mxu0 %v2987_v53  ;;  %2406 = vmatprep.subr.bf16.mxu1 %v2990_v57 }
 0x282   :  { %2376 = vmatpush1.bf16.msra.mxu0 %v2993_v63  ;;  %2408 = vmatpush1.bf16.msra.mxu1 %v2997_v1 }
 0x283   :  { %2378 = vmatprep.subr.bf16.mxu0 %v2999_v2  ;;  %2410 = vmatprep.subr.bf16.mxu1 %v3002_v7 }
 0x286   :  { %2380 = vmatpush1.bf16.msra.mxu0 %v3005_v16  ;;  %2412 = vmatpush1.bf16.msra.mxu1 %v3009_v20 }
 0x287   :  { %2382 = vmatprep.subr.bf16.mxu0 %v3011_v21  ;;  %2414 = vmatprep.subr.bf16.mxu1 %v3017_v28 }
 0x28a   :  { %2384 = vmatpush1.bf16.msra.mxu0 %v3020_v36  ;;  %2416 = vmatpush1.bf16.msra.mxu1 %v3024_v37 }
 0x28b   :  { %2386 = vmatprep.subr.bf16.mxu0 %v3026_v38  ;;  %2418 = vmatprep.subr.bf16.mxu1 %v3029_v43 }
 0x28e   :  { %2388 = vmatpush1.bf16.msra.mxu0 %v3032_v47  ;;  %2420 = vmatpush1.bf16.msra.mxu1 %v3036_v48 }
 0x28f   :  { %2422 = vmatprep.subr.bf16.mxu0 %v2942_v4  ;;  %2454 = vmatprep.subr.bf16.mxu1 %v2944_v8 }
 0x344   :  { %v702_v5 = vpop.f32.mrb[4].mxu0  ;;  %v773_v6 = vpop.f32.mrb[4].mxu1 }
 0x345   :  { %v704_v10 = vpop.f32.mrb[5].mxu0  ;;  %v775_v11 = vpop.f32.mrb[5].mxu1 }
 0x346   :  { %v782_v15 = vcombine.low %v702_v5, %v704_v10  ;;  %v783_v19 = vcombine.low %v773_v6, %v775_v11 }
 0x348   :  { %v790_v23 = vrot.slane %v782_v15, %v3077_v60  ;;  %v797_v24 = vrot.slane %v783_v19, %v3077_v60 }
 0x34a   :  { %v798_v25 = vcombine.low %v790_v23, %v797_v24  ;;  %v799_v29 = vcombine.high %v790_v23, %v797_v24 }
 0x34c   :  { %v806_v33 = vrot.slane %v798_v25, %v3077_v60  ;;  %v813_v34 = vrot.slane %v799_v29, %v3077_v60 }
 0x34e   :  { %v816_v41 = vadd.f32 %v806_v33, %v615_v30  ;;  %v817_v42 = vadd.f32 %v813_v34, %v617_v32 }
 0x350   :  { %v2151_v45 = vmul.f32 -1.442695, %v816_v41  ;;  %v2152_v46 = vmul.f32 -1.442695, %v817_v42  ;;  %v832_v58 = vrot.slane %v816_v41, 3  ;;  %v833_v61 = vrot.slane %v817_v42, 3 }
 0x352   :  { %2718 = vpow2.f32 %v2151_v45 }
 0x353   :  { %2720 = vpow2.f32 %v2152_v46 }
 0x35c   :  { %v2719_v49 = vpop.eup %2718 }
 0x35d   :  { %v2721_v55 = vpop.eup %2720  ;;  %v824_v56 = vadd.f32 1.0, %v2719_v49 }
 0x35e   :  { %v825_v59 = vadd.f32 1.0, %v2721_v55 }
 0x35f   :  { %2722 = vrcp.f32 %v824_v56 }
 0x360   :  { %2724 = vrcp.f32 %v825_v59 }
 0x361   :  { %2726 = vtanh.f32 %v832_v58 }
 0x362   :  { %2728 = vtanh.f32 %v833_v61 }
 0x369   :  { %v2723_v62 = vpop.eup %2722 }
 0x36a   :  { %v2725_v12 = vpop.eup %2724  ;;  %v840_v14 = vrot.slane %v2723_v62, 1  ;;  %v852_v25 = vrot.slane %v2723_v62, 2 }
 0x36b   :  { %v2727_v3 = vpop.eup %2726  ;;  %v841_v5 = vrot.slane %v2725_v12, 1  ;;  %v853_v30 = vrot.slane %v2725_v12, 2 }
 0x36c   :  { %v2729_v6 = vpop.eup %2728  ;;  %v844_v10 = vmul.f32 %v840_v14, %v3133_v50  ;;  %v846_v11 = vmul.f32 %v2727_v3, %v2723_v62  ;;  %v863_v14 = vld [vmem:[#allocation4 + $0x23] ss:$8 sm:$0xf] }
 0x36d   :  { %v845_v15 = vmul.f32 %v841_v5, %v3135_v54  ;;  %v847_v19 = vmul.f32 %v2729_v6, %v2725_v12  ;;  %v861_v12 = vld [vmem:[#allocation4 + $0x3] ss:$8 sm:$0xf] }
 0x36e   :  { %v3181_v23 = vadd.f32 %v846_v11, %v844_v10 }
 0x36f   :  { %v3183_v24 = vadd.f32 %v847_v19, %v845_v15 }
 0x370   :  { %2730 = vtanh.f32 %v3181_v23 }
 0x371   :  { %2732 = vtanh.f32 %v3183_v24 }
 0x37a   :  { %v2731_v29 = vpop.eup %2730 }
 0x37b   :  { %v2733_v32 = vpop.eup %2732  ;;  %v856_v33 = vmul.f32 %v2731_v29, %v852_v25 }
 0x37c   :  { %v857_v34 = vmul.f32 %v2733_v32, %v853_v30 }
 0x37d   :  { %858 = vst [vmem:[#allocation9 + $0x2] sm:$0x1] %v856_v33 }
 0x37e   :  { %859 = vst [vmem:[#allocation9 + $0xa] sm:$0x1] %v857_v34  ;;  %v866_v50 = vcombine.low %v856_v33, %v857_v34 }
 0x380   :  { %v873_v54 = vrot.slane %v866_v50, %v3077_v60 }
 0x382   :  { %v880_v41 = vrot.slane %v873_v54, %v3077_v60 }
 0x384   :  { %947 = vmatmul.mubr.f32.vlgmr.msra.gmra.mrb[6].mxu0 %v880_v41  ;;  %1018 = vmatmul.mubr.f32.vlgmr.msra.gmra.mrb[6].mxu1 %v880_v41 }
 0x385   :  { %2424 = vmatpush1.bf16.msra.mxu0 %v2946_v9  ;;  %2456 = vmatpush1.bf16.msra.mxu1 %v2949_v13 }
 0x386   :  { %2426 = vmatprep.subr.bf16.mxu0 %v2953_v17  ;;  %2458 = vmatprep.subr.bf16.mxu1 %v2955_v18 }
 0x387   :  { %1192 = vmatprep.mubr.f32.mxu0 %v2890_v0  ;;  %1263 = vmatprep.mubr.f32.mxu1 %v2890_v0 }
 0x389   :  { %2428 = vmatpush1.bf16.msra.mxu0 %v2958_v22  ;;  %2460 = vmatpush1.bf16.msra.mxu1 %v2962_v26 }
 0x38a   :  { %2430 = vmatprep.subr.bf16.mxu0 %v2964_v27  ;;  %2462 = vmatprep.subr.bf16.mxu1 %v2966_v31 }
 0x38d   :  { %2432 = vmatpush1.bf16.msra.mxu0 %v2969_v35  ;;  %2464 = vmatpush1.bf16.msra.mxu1 %v2973_v39 }
 0x38e   :  { %2434 = vmatprep.subr.bf16.mxu0 %v2975_v40  ;;  %2466 = vmatprep.subr.bf16.mxu1 %v2978_v44 }
 0x391   :  { %2436 = vmatpush1.bf16.msra.mxu0 %v2981_v51  ;;  %2468 = vmatpush1.bf16.msra.mxu1 %v2985_v52 }
 0x392   :  { %2438 = vmatprep.subr.bf16.mxu0 %v2987_v53  ;;  %2470 = vmatprep.subr.bf16.mxu1 %v2990_v57 }
 0x395   :  { %2440 = vmatpush1.bf16.msra.mxu0 %v2993_v63  ;;  %2472 = vmatpush1.bf16.msra.mxu1 %v2997_v1 }
 0x396   :  { %2442 = vmatprep.subr.bf16.mxu0 %v2999_v2  ;;  %2474 = vmatprep.subr.bf16.mxu1 %v3002_v7 }
 0x399   :  { %2444 = vmatpush1.bf16.msra.mxu0 %v3005_v16  ;;  %2476 = vmatpush1.bf16.msra.mxu1 %v3009_v20 }
 0x39a   :  { %2446 = vmatprep.subr.bf16.mxu0 %v3011_v21  ;;  %2478 = vmatprep.subr.bf16.mxu1 %v3017_v28 }
 0x39d   :  { %2448 = vmatpush1.bf16.msra.mxu0 %v3020_v36  ;;  %2480 = vmatpush1.bf16.msra.mxu1 %v3024_v37 }
 0x39e   :  { %2450 = vmatprep.subr.bf16.mxu0 %v3026_v38  ;;  %2482 = vmatprep.subr.bf16.mxu1 %v3029_v43 }
 0x3a1   :  { %2452 = vmatpush1.bf16.msra.mxu0 %v3032_v47  ;;  %2484 = vmatpush1.bf16.msra.mxu1 %v3036_v48 }
 0x3a2   :  { %2486 = vmatprep.subr.bf16.mxu0 %v2942_v4  ;;  %2518 = vmatprep.subr.bf16.mxu1 %v2944_v8 }
 0x457   :  { %v948_v42 = vpop.f32.mrb[6].mxu0  ;;  %v1019_v45 = vpop.f32.mrb[6].mxu1 }
 0x458   :  { %v950_v46 = vpop.f32.mrb[7].mxu0  ;;  %v1021_v49 = vpop.f32.mrb[7].mxu1 }
 0x459   :  { %v1028_v55 = vcombine.low %v948_v42, %v950_v46  ;;  %v1029_v56 = vcombine.low %v1019_v45, %v1021_v49 }
 0x45b   :  { %v1036_v58 = vrot.slane %v1028_v55, %v3077_v60  ;;  %v1043_v59 = vrot.slane %v1029_v56, %v3077_v60 }
 0x45d   :  { %v1044_v61 = vcombine.low %v1036_v58, %v1043_v59  ;;  %v1045_v62 = vcombine.high %v1036_v58, %v1043_v59 }
 0x45f   :  { %v1052_v3 = vrot.slane %v1044_v61, %v3077_v60  ;;  %v1059_v5 = vrot.slane %v1045_v62, %v3077_v60 }
 0x461   :  { %v1062_v6 = vadd.f32 %v1052_v3, %v861_v12  ;;  %v1063_v10 = vadd.f32 %v1059_v5, %v863_v14 }
 0x463   :  { %v2153_v11 = vmul.f32 -1.442695, %v1062_v6  ;;  %v2154_v15 = vmul.f32 -1.442695, %v1063_v10  ;;  %v1078_v30 = vrot.slane %v1062_v6, 3  ;;  %v1079_v33 = vrot.slane %v1063_v10, 3 }
 0x465   :  { %2734 = vpow2.f32 %v2153_v11 }
 0x466   :  { %2736 = vpow2.f32 %v2154_v15 }
 0x46f   :  { %v2735_v19 = vpop.eup %2734 }
 0x470   :  { %v2737_v25 = vpop.eup %2736  ;;  %v1070_v29 = vadd.f32 1.0, %v2735_v19 }
 0x471   :  { %v1071_v32 = vadd.f32 1.0, %v2737_v25 }
 0x472   :  { %2738 = vrcp.f32 %v1070_v29 }
 0x473   :  { %2740 = vrcp.f32 %v1071_v32 }
 0x474   :  { %2742 = vtanh.f32 %v1078_v30 }
 0x475   :  { %2744 = vtanh.f32 %v1079_v33 }
 0x47c   :  { %v2739_v34 = vpop.eup %2738 }
 0x47d   :  { %v2741_v50 = vpop.eup %2740  ;;  %v1086_v54 = vrot.slane %v2739_v34, 1  ;;  %v1098_v61 = vrot.slane %v2739_v34, 2 }
 0x47e   :  { %v2743_v41 = vpop.eup %2742  ;;  %v1087_v42 = vrot.slane %v2741_v50, 1  ;;  %v1099_v12 = vrot.slane %v2741_v50, 2 }
 0x47f   :  { %v2745_v45 = vpop.eup %2744  ;;  %v1090_v46 = vmul.f32 %v1086_v54, %v3181_v23  ;;  %v1092_v49 = vmul.f32 %v2743_v41, %v2739_v34  ;;  %v1109_v54 = vld [vmem:[#allocation4 + $0x24] ss:$8 sm:$0xf] }
 0x480   :  { %v1091_v55 = vmul.f32 %v1087_v42, %v3183_v24  ;;  %v1093_v56 = vmul.f32 %v2745_v45, %v2741_v50  ;;  %v1107_v50 = vld [vmem:[#allocation4 + $0x4] ss:$8 sm:$0xf] }
 0x481   :  { %v3229_v58 = vadd.f32 %v1092_v49, %v1090_v46 }
 0x482   :  { %v3231_v59 = vadd.f32 %v1093_v56, %v1091_v55 }
 0x483   :  { %2746 = vtanh.f32 %v3229_v58 }
 0x484   :  { %2748 = vtanh.f32 %v3231_v59 }
 0x48d   :  { %v2747_v62 = vpop.eup %2746 }
 0x48e   :  { %v2749_v14 = vpop.eup %2748  ;;  %v1102_v3 = vmul.f32 %v2747_v62, %v1098_v61 }
 0x48f   :  { %v1103_v5 = vmul.f32 %v2749_v14, %v1099_v12 }
 0x490   :  { %1104 = vst [vmem:[#allocation9 + $0x3] sm:$0x1] %v1102_v3 }
 0x491   :  { %1105 = vst [vmem:[#allocation9 + $0xb] sm:$0x1] %v1103_v5  ;;  %v1112_v23 = vcombine.low %v1102_v3, %v1103_v5 }
 0x493   :  { %v1119_v24 = vrot.slane %v1112_v23, %v3077_v60 }
 0x495   :  { %v1126_v6 = vrot.slane %v1119_v24, %v3077_v60 }
 0x497   :  { %1193 = vmatmul.mubr.f32.vlgmr.msra.gmra.mrb[8].mxu0 %v1126_v6  ;;  %1264 = vmatmul.mubr.f32.vlgmr.msra.gmra.mrb[8].mxu1 %v1126_v6 }
 0x498   :  { %2488 = vmatpush1.bf16.msra.mxu0 %v2946_v9  ;;  %2520 = vmatpush1.bf16.msra.mxu1 %v2949_v13 }
 0x499   :  { %2490 = vmatprep.subr.bf16.mxu0 %v2953_v17  ;;  %2522 = vmatprep.subr.bf16.mxu1 %v2955_v18 }
 0x49a   :  { %1438 = vmatprep.mubr.f32.mxu0 %v2890_v0  ;;  %1509 = vmatprep.mubr.f32.mxu1 %v2890_v0 }
 0x49c   :  { %2492 = vmatpush1.bf16.msra.mxu0 %v2958_v22  ;;  %2524 = vmatpush1.bf16.msra.mxu1 %v2962_v26 }
 0x49d   :  { %2494 = vmatprep.subr.bf16.mxu0 %v2964_v27  ;;  %2526 = vmatprep.subr.bf16.mxu1 %v2966_v31 }
 0x4a0   :  { %2496 = vmatpush1.bf16.msra.mxu0 %v2969_v35  ;;  %2528 = vmatpush1.bf16.msra.mxu1 %v2973_v39 }
 0x4a1   :  { %2498 = vmatprep.subr.bf16.mxu0 %v2975_v40  ;;  %2530 = vmatprep.subr.bf16.mxu1 %v2978_v44 }
 0x4a4   :  { %2500 = vmatpush1.bf16.msra.mxu0 %v2981_v51  ;;  %2532 = vmatpush1.bf16.msra.mxu1 %v2985_v52 }
 0x4a5   :  { %2502 = vmatprep.subr.bf16.mxu0 %v2987_v53  ;;  %2534 = vmatprep.subr.bf16.mxu1 %v2990_v57 }
 0x4a8   :  { %2504 = vmatpush1.bf16.msra.mxu0 %v2993_v63  ;;  %2536 = vmatpush1.bf16.msra.mxu1 %v2997_v1 }
 0x4a9   :  { %2506 = vmatprep.subr.bf16.mxu0 %v2999_v2  ;;  %2538 = vmatprep.subr.bf16.mxu1 %v3002_v7 }
 0x4ac   :  { %2508 = vmatpush1.bf16.msra.mxu0 %v3005_v16  ;;  %2540 = vmatpush1.bf16.msra.mxu1 %v3009_v20 }
 0x4ad   :  { %2510 = vmatprep.subr.bf16.mxu0 %v3011_v21  ;;  %2542 = vmatprep.subr.bf16.mxu1 %v3017_v28 }
 0x4b0   :  { %2512 = vmatpush1.bf16.msra.mxu0 %v3020_v36  ;;  %2544 = vmatpush1.bf16.msra.mxu1 %v3024_v37 }
 0x4b1   :  { %2514 = vmatprep.subr.bf16.mxu0 %v3026_v38  ;;  %2546 = vmatprep.subr.bf16.mxu1 %v3029_v43 }
 0x4b4   :  { %2516 = vmatpush1.bf16.msra.mxu0 %v3032_v47  ;;  %2548 = vmatpush1.bf16.msra.mxu1 %v3036_v48 }
 0x4b5   :  { %2550 = vmatprep.subr.bf16.mxu0 %v2942_v4  ;;  %2582 = vmatprep.subr.bf16.mxu1 %v2944_v8 }
 0x56a   :  { %v1194_v10 = vpop.f32.mrb[8].mxu0  ;;  %v1265_v11 = vpop.f32.mrb[8].mxu1 }
 0x56b   :  { %v1196_v15 = vpop.f32.mrb[9].mxu0  ;;  %v1267_v19 = vpop.f32.mrb[9].mxu1 }
 0x56c   :  { %v1274_v25 = vcombine.low %v1194_v10, %v1196_v15  ;;  %v1275_v29 = vcombine.low %v1265_v11, %v1267_v19 }
 0x56e   :  { %v1282_v30 = vrot.slane %v1274_v25, %v3077_v60  ;;  %v1289_v32 = vrot.slane %v1275_v29, %v3077_v60 }
 0x570   :  { %v1290_v33 = vcombine.low %v1282_v30, %v1289_v32  ;;  %v1291_v34 = vcombine.high %v1282_v30, %v1289_v32 }
 0x572   :  { %v1298_v41 = vrot.slane %v1290_v33, %v3077_v60  ;;  %v1305_v42 = vrot.slane %v1291_v34, %v3077_v60 }
 0x574   :  { %v1308_v45 = vadd.f32 %v1298_v41, %v1107_v50  ;;  %v1309_v46 = vadd.f32 %v1305_v42, %v1109_v54 }
 0x576   :  { %v2155_v49 = vmul.f32 -1.442695, %v1308_v45  ;;  %v2156_v55 = vmul.f32 -1.442695, %v1309_v46  ;;  %v1324_v12 = vrot.slane %v1308_v45, 3  ;;  %v1325_v3 = vrot.slane %v1309_v46, 3 }
 0x578   :  { %2750 = vpow2.f32 %v2155_v49 }
 0x579   :  { %2752 = vpow2.f32 %v2156_v55 }
 0x582   :  { %v2751_v56 = vpop.eup %2750 }
 0x583   :  { %v2753_v61 = vpop.eup %2752  ;;  %v1316_v62 = vadd.f32 1.0, %v2751_v56 }
 0x584   :  { %v1317_v14 = vadd.f32 1.0, %v2753_v61 }
 0x585   :  { %2754 = vrcp.f32 %v1316_v62 }
 0x586   :  { %2756 = vrcp.f32 %v1317_v14 }
 0x587   :  { %2758 = vtanh.f32 %v1324_v12 }
 0x588   :  { %2760 = vtanh.f32 %v1325_v3 }
 0x58f   :  { %v2755_v5 = vpop.eup %2754 }
 0x590   :  { %v2757_v23 = vpop.eup %2756  ;;  %v1332_v24 = vrot.slane %v2755_v5, 1  ;;  %v1344_v33 = vrot.slane %v2755_v5, 2 }
 0x591   :  { %v2759_v6 = vpop.eup %2758  ;;  %v1333_v10 = vrot.slane %v2757_v23, 1  ;;  %v1345_v50 = vrot.slane %v2757_v23, 2 }
 0x592   :  { %v2761_v11 = vpop.eup %2760  ;;  %v1336_v15 = vmul.f32 %v1332_v24, %v3229_v58  ;;  %v1338_v19 = vmul.f32 %v2759_v6, %v2755_v5  ;;  %v1355_v24 = vld [vmem:[#allocation4 + $0x25] ss:$8 sm:$0xf] }
 0x593   :  { %v1337_v25 = vmul.f32 %v1333_v10, %v3231_v59  ;;  %v1339_v29 = vmul.f32 %v2761_v11, %v2757_v23  ;;  %v1353_v23 = vld [vmem:[#allocation4 + $0x5] ss:$8 sm:$0xf] }
 0x594   :  { %v3277_v30 = vadd.f32 %v1338_v19, %v1336_v15 }
 0x595   :  { %v3279_v32 = vadd.f32 %v1339_v29, %v1337_v25 }
 0x596   :  { %2762 = vtanh.f32 %v3277_v30 }
 0x597   :  { %2764 = vtanh.f32 %v3279_v32 }
 0x5a0   :  { %v2763_v34 = vpop.eup %2762 }
 0x5a1   :  { %v2765_v54 = vpop.eup %2764  ;;  %v1348_v41 = vmul.f32 %v2763_v34, %v1344_v33 }
 0x5a2   :  { %v1349_v42 = vmul.f32 %v2765_v54, %v1345_v50 }
 0x5a3   :  { %1350 = vst [vmem:[#allocation9 + $0x4] sm:$0x1] %v1348_v41 }
 0x5a4   :  { %1351 = vst [vmem:[#allocation9 + $0xc] sm:$0x1] %v1349_v42  ;;  %v1358_v58 = vcombine.low %v1348_v41, %v1349_v42 }
 0x5a6   :  { %v1365_v59 = vrot.slane %v1358_v58, %v3077_v60 }
 0x5a8   :  { %v1372_v45 = vrot.slane %v1365_v59, %v3077_v60 }
 0x5aa   :  { %1439 = vmatmul.mubr.f32.vlgmr.msra.gmra.mrb[10].mxu0 %v1372_v45  ;;  %1510 = vmatmul.mubr.f32.vlgmr.msra.gmra.mrb[10].mxu1 %v1372_v45 }
 0x5ab   :  { %2552 = vmatpush1.bf16.msra.mxu0 %v2946_v9  ;;  %2584 = vmatpush1.bf16.msra.mxu1 %v2949_v13 }
 0x5ac   :  { %2554 = vmatprep.subr.bf16.mxu0 %v2953_v17  ;;  %2586 = vmatprep.subr.bf16.mxu1 %v2955_v18 }
 0x5ad   :  { %1684 = vmatprep.mubr.f32.mxu0 %v2890_v0  ;;  %1755 = vmatprep.mubr.f32.mxu1 %v2890_v0 }
 0x5af   :  { %2556 = vmatpush1.bf16.msra.mxu0 %v2958_v22  ;;  %2588 = vmatpush1.bf16.msra.mxu1 %v2962_v26 }
 0x5b0   :  { %2558 = vmatprep.subr.bf16.mxu0 %v2964_v27  ;;  %2590 = vmatprep.subr.bf16.mxu1 %v2966_v31 }
 0x5b3   :  { %2560 = vmatpush1.bf16.msra.mxu0 %v2969_v35  ;;  %2592 = vmatpush1.bf16.msra.mxu1 %v2973_v39 }
 0x5b4   :  { %2562 = vmatprep.subr.bf16.mxu0 %v2975_v40  ;;  %2594 = vmatprep.subr.bf16.mxu1 %v2978_v44 }
 0x5b7   :  { %2564 = vmatpush1.bf16.msra.mxu0 %v2981_v51  ;;  %2596 = vmatpush1.bf16.msra.mxu1 %v2985_v52 }
 0x5b8   :  { %2566 = vmatprep.subr.bf16.mxu0 %v2987_v53  ;;  %2598 = vmatprep.subr.bf16.mxu1 %v2990_v57 }
 0x5bb   :  { %2568 = vmatpush1.bf16.msra.mxu0 %v2993_v63  ;;  %2600 = vmatpush1.bf16.msra.mxu1 %v2997_v1 }
 0x5bc   :  { %2570 = vmatprep.subr.bf16.mxu0 %v2999_v2  ;;  %2602 = vmatprep.subr.bf16.mxu1 %v3002_v7 }
 0x5bf   :  { %2572 = vmatpush1.bf16.msra.mxu0 %v3005_v16  ;;  %2604 = vmatpush1.bf16.msra.mxu1 %v3009_v20 }
 0x5c0   :  { %2574 = vmatprep.subr.bf16.mxu0 %v3011_v21  ;;  %2606 = vmatprep.subr.bf16.mxu1 %v3017_v28 }
 0x5c3   :  { %2576 = vmatpush1.bf16.msra.mxu0 %v3020_v36  ;;  %2608 = vmatpush1.bf16.msra.mxu1 %v3024_v37 }
 0x5c4   :  { %2578 = vmatprep.subr.bf16.mxu0 %v3026_v38  ;;  %2610 = vmatprep.subr.bf16.mxu1 %v3029_v43 }
 0x5c7   :  { %2580 = vmatpush1.bf16.msra.mxu0 %v3032_v47  ;;  %2612 = vmatpush1.bf16.msra.mxu1 %v3036_v48 }
 0x5c8   :  { %2614 = vmatprep.subr.bf16.mxu0 %v2942_v4  ;;  %2646 = vmatprep.subr.bf16.mxu1 %v2944_v8 }
 0x67d   :  { %v1440_v46 = vpop.f32.mrb[10].mxu0  ;;  %v1511_v49 = vpop.f32.mrb[10].mxu1 }
 0x67e   :  { %v1442_v55 = vpop.f32.mrb[11].mxu0  ;;  %v1513_v56 = vpop.f32.mrb[11].mxu1 }
 0x67f   :  { %v1520_v61 = vcombine.low %v1440_v46, %v1442_v55  ;;  %v1521_v62 = vcombine.low %v1511_v49, %v1513_v56 }
 0x681   :  { %v1528_v12 = vrot.slane %v1520_v61, %v3077_v60  ;;  %v1535_v14 = vrot.slane %v1521_v62, %v3077_v60 }
 0x683   :  { %v1536_v3 = vcombine.low %v1528_v12, %v1535_v14  ;;  %v1537_v5 = vcombine.high %v1528_v12, %v1535_v14 }
 0x685   :  { %v1544_v6 = vrot.slane %v1536_v3, %v3077_v60  ;;  %v1551_v4 = vrot.slane %v1537_v5, %v3077_v60 }
 0x687   :  { %v1554_v10 = vadd.f32 %v1544_v6, %v1353_v23  ;;  %v1555_v8 = vadd.f32 %v1551_v4, %v1355_v24 }
 0x689   :  { %v2157_v11 = vmul.f32 -1.442695, %v1554_v10  ;;  %v2158_v15 = vmul.f32 -1.442695, %v1555_v8  ;;  %v1570_v33 = vrot.slane %v1554_v10, 3  ;;  %v1571_v50 = vrot.slane %v1555_v8, 3 }
 0x68b   :  { %2766 = vpow2.f32 %v2157_v11 }
 0x68c   :  { %2768 = vpow2.f32 %v2158_v15 }
 0x695   :  { %v2767_v19 = vpop.eup %2766 }
 0x696   :  { %v2769_v25 = vpop.eup %2768  ;;  %v1562_v29 = vadd.f32 1.0, %v2767_v19 }
 0x697   :  { %v1563_v34 = vadd.f32 1.0, %v2769_v25 }
 0x698   :  { %2770 = vrcp.f32 %v1562_v29 }
 0x699   :  { %2772 = vrcp.f32 %v1563_v34 }
 0x69a   :  { %2774 = vtanh.f32 %v1570_v33 }
 0x69b   :  { %2776 = vtanh.f32 %v1571_v50 }
 0x6a2   :  { %v2771_v54 = vpop.eup %2770 }
 0x6a3   :  { %v2773_v41 = vpop.eup %2772  ;;  %v1578_v42 = vrot.slane %v2771_v54, 1  ;;  %v1590_v12 = vrot.slane %v2771_v54, 2 }
 0x6a4   :  { %v2775_v58 = vpop.eup %2774  ;;  %v1579_v59 = vrot.slane %v2773_v41, 1  ;;  %v1591_v3 = vrot.slane %v2773_v41, 2 }
 0x6a5   :  { %v2777_v45 = vpop.eup %2776  ;;  %v1582_v46 = vmul.f32 %v1578_v42, %v3277_v30  ;;  %v1584_v49 = vmul.f32 %v2775_v58, %v2771_v54 }
 0x6a6   :  { %v1583_v55 = vmul.f32 %v1579_v59, %v3279_v32  ;;  %v1585_v56 = vmul.f32 %v2777_v45, %v2773_v41 }
 0x6a7   :  { %v3325_v61 = vadd.f32 %v1584_v49, %v1582_v46 }
 0x6a8   :  { %v3327_v62 = vadd.f32 %v1585_v56, %v1583_v55 }
 0x6a9   :  { %2778 = vtanh.f32 %v3325_v61 }
 0x6aa   :  { %2780 = vtanh.f32 %v3327_v62 }
 0x6b3   :  { %v2779_v14 = vpop.eup %2778 }
 0x6b4   :  { %v2781_v5 = vpop.eup %2780  ;;  %v1594_v23 = vmul.f32 %v2779_v14, %v1590_v12  ;;  %v1845_v14 = vld [vmem:[#allocation4 + $0x7] ss:$8 sm:$0xf] }
 0x6b5   :  { %v1595_v24 = vmul.f32 %v2781_v5, %v1591_v3  ;;  %v1847_v3 = vld [vmem:[#allocation4 + $0x27] ss:$8 sm:$0xf] }
 0x6b6   :  { %1596 = vst [vmem:[#allocation9 + $0x5] sm:$0x1] %v1594_v23 }
 0x6b7   :  { %1597 = vst [vmem:[#allocation9 + $0xd] sm:$0x1] %v1595_v24  ;;  %v1604_v30 = vcombine.low %v1594_v23, %v1595_v24 }
 0x6b9   :  { %v1611_v32 = vrot.slane %v1604_v30, %v3077_v60 }
 0x6bb   :  { %v1618_v6 = vrot.slane %v1611_v32, %v3077_v60 }
 0x6bd   :  { %1685 = vmatmul.mubr.f32.vlgmr.msra.gmra.mrb[12].mxu0 %v1618_v6  ;;  %1756 = vmatmul.mubr.f32.vlgmr.msra.gmra.mrb[12].mxu1 %v1618_v6 }
 0x6be   :  { %2616 = vmatpush1.bf16.msra.mxu0 %v2946_v9  ;;  %2648 = vmatpush1.bf16.msra.mxu1 %v2949_v13 }
 0x6bf   :  { %2618 = vmatprep.subr.bf16.mxu0 %v2953_v17  ;;  %2650 = vmatprep.subr.bf16.mxu1 %v2955_v18 }
 0x6c0   :  { %1930 = vmatprep.mubr.f32.mxu0 %v2890_v0  ;;  %2001 = vmatprep.mubr.f32.mxu1 %v2890_v0 }
 0x6c2   :  { %2620 = vmatpush1.bf16.msra.mxu0 %v2958_v22  ;;  %2652 = vmatpush1.bf16.msra.mxu1 %v2962_v26 }
 0x6c3   :  { %2622 = vmatprep.subr.bf16.mxu0 %v2964_v27  ;;  %2654 = vmatprep.subr.bf16.mxu1 %v2966_v31 }
 0x6c6   :  { %2624 = vmatpush1.bf16.msra.mxu0 %v2969_v35  ;;  %2656 = vmatpush1.bf16.msra.mxu1 %v2973_v39  ;;  %v1599_v39 = vld [vmem:[#allocation4 + $0x6] ss:$8 sm:$0xf] }
 0x6c7   :  { %2626 = vmatprep.subr.bf16.mxu0 %v2975_v40  ;;  %2658 = vmatprep.subr.bf16.mxu1 %v2978_v44  ;;  %v1601_v40 = vld [vmem:[#allocation4 + $0x26] ss:$8 sm:$0xf] }
 0x6ca   :  { %2628 = vmatpush1.bf16.msra.mxu0 %v2981_v51  ;;  %2660 = vmatpush1.bf16.msra.mxu1 %v2985_v52 }
 0x6cb   :  { %2630 = vmatprep.subr.bf16.mxu0 %v2987_v53  ;;  %2662 = vmatprep.subr.bf16.mxu1 %v2990_v57 }
 0x6ce   :  { %2632 = vmatpush1.bf16.msra.mxu0 %v2993_v63  ;;  %2664 = vmatpush1.bf16.msra.mxu1 %v2997_v1 }
 0x6cf   :  { %2634 = vmatprep.subr.bf16.mxu0 %v2999_v2  ;;  %2666 = vmatprep.subr.bf16.mxu1 %v3002_v7 }
 0x6d2   :  { %2636 = vmatpush1.bf16.msra.mxu0 %v3005_v16  ;;  %2668 = vmatpush1.bf16.msra.mxu1 %v3009_v20 }
 0x6d3   :  { %2638 = vmatprep.subr.bf16.mxu0 %v3011_v21  ;;  %2670 = vmatprep.subr.bf16.mxu1 %v3017_v28 }
 0x6d6   :  { %2640 = vmatpush1.bf16.msra.mxu0 %v3020_v36  ;;  %2672 = vmatpush1.bf16.msra.mxu1 %v3024_v37 }
 0x6d7   :  { %2642 = vmatprep.subr.bf16.mxu0 %v3026_v38  ;;  %2674 = vmatprep.subr.bf16.mxu1 %v3029_v43 }
 0x6da   :  { %2644 = vmatpush1.bf16.msra.mxu0 %v3032_v47  ;;  %2676 = vmatpush1.bf16.msra.mxu1 %v3036_v48 }
 0x790   :  { %v1686_v0 = vpop.f32.mrb[12].mxu0  ;;  %v1757_v9 = vpop.f32.mrb[12].mxu1 }
 0x791   :  { %v1688_v13 = vpop.f32.mrb[13].mxu0  ;;  %v1759_v17 = vpop.f32.mrb[13].mxu1 }
 0x792   :  { %v1766_v18 = vcombine.low %v1686_v0, %v1688_v13  ;;  %v1767_v22 = vcombine.low %v1757_v9, %v1759_v17 }
 0x794   :  { %v1774_v26 = vrot.slane %v1766_v18, %v3077_v60  ;;  %v1781_v27 = vrot.slane %v1767_v22, %v3077_v60 }
 0x796   :  { %v1782_v31 = vcombine.low %v1774_v26, %v1781_v27  ;;  %v1783_v35 = vcombine.high %v1774_v26, %v1781_v27 }
 0x798   :  { %v1790_v44 = vrot.slane %v1782_v31, %v3077_v60  ;;  %v1797_v51 = vrot.slane %v1783_v35, %v3077_v60 }
 0x79a   :  { %v1800_v52 = vadd.f32 %v1790_v44, %v1599_v39  ;;  %v1801_v53 = vadd.f32 %v1797_v51, %v1601_v40 }
 0x79c   :  { %v2159_v57 = vmul.f32 -1.442695, %v1800_v52  ;;  %v2160_v63 = vmul.f32 -1.442695, %v1801_v53  ;;  %v1816_v16 = vrot.slane %v1800_v52, 3  ;;  %v1817_v21 = vrot.slane %v1801_v53, 3 }
 0x79e   :  { %2782 = vpow2.f32 %v2159_v57 }
 0x79f   :  { %2784 = vpow2.f32 %v2160_v63 }
 0x7a8   :  { %v2783_v1 = vpop.eup %2782 }
 0x7a9   :  { %v2785_v2 = vpop.eup %2784  ;;  %v1808_v7 = vadd.f32 1.0, %v2783_v1 }
 0x7aa   :  { %v1809_v20 = vadd.f32 1.0, %v2785_v2 }
 0x7ab   :  { %2786 = vrcp.f32 %v1808_v7 }
 0x7ac   :  { %2788 = vrcp.f32 %v1809_v20 }
 0x7ad   :  { %2790 = vtanh.f32 %v1816_v16 }
 0x7ae   :  { %2792 = vtanh.f32 %v1817_v21 }
 0x7b5   :  { %v2787_v28 = vpop.eup %2786 }
 0x7b6   :  { %v2789_v36 = vpop.eup %2788  ;;  %v1824_v37 = vrot.slane %v2787_v28, 1  ;;  %v1836_v19 = vrot.slane %v2787_v28, 2 }
 0x7b7   :  { %v2791_v38 = vpop.eup %2790  ;;  %v1825_v43 = vrot.slane %v2789_v36, 1  ;;  %v1837_v29 = vrot.slane %v2789_v36, 2 }
 0x7b8   :  { %v2793_v47 = vpop.eup %2792  ;;  %v1828_v48 = vmul.f32 %v1824_v37, %v3325_v61  ;;  %v1830_v4 = vmul.f32 %v2791_v38, %v2787_v28 }
 0x7b9   :  { %v1829_v10 = vmul.f32 %v1825_v43, %v3327_v62  ;;  %v1831_v8 = vmul.f32 %v2793_v47, %v2789_v36 }
 0x7ba   :  { %v1832_v11 = vadd.f32 %v1830_v4, %v1828_v48 }
 0x7bb   :  { %v1833_v15 = vadd.f32 %v1831_v8, %v1829_v10 }
 0x7bc   :  { %2794 = vtanh.f32 %v1832_v11 }
 0x7bd   :  { %2796 = vtanh.f32 %v1833_v15 }
 0x7c6   :  { %v2795_v25 = vpop.eup %2794 }
 0x7c7   :  { %v2797_v33 = vpop.eup %2796  ;;  %v1840_v34 = vmul.f32 %v2795_v25, %v1836_v19 }
 0x7c8   :  { %v1841_v50 = vmul.f32 %v2797_v33, %v1837_v29 }
 0x7c9   :  { %1842 = vst [vmem:[#allocation9 + $0x6] sm:$0x1] %v1840_v34 }
 0x7ca   :  { %1843 = vst [vmem:[#allocation9 + $0xe] sm:$0x1] %v1841_v50  ;;  %v1850_v54 = vcombine.low %v1840_v34, %v1841_v50 }
 0x7cc   :  { %v1857_v41 = vrot.slane %v1850_v54, %v3077_v60 }
 0x7ce   :  { %v1864_v42 = vrot.slane %v1857_v41, %v3077_v60 }
 0x7d0   :  { %1931 = vmatmul.mubr.f32.vlgmr.msra.gmra.mrb[14].mxu0 %v1864_v42  ;;  %2002 = vmatmul.mubr.f32.vlgmr.msra.gmra.mrb[14].mxu1 %v1864_v42 }
 0x8a3   :  { %v1932_v58 = vpop.f32.mrb[14].mxu0  ;;  %v2003_v59 = vpop.f32.mrb[14].mxu1 }
 0x8a4   :  { %v1934_v45 = vpop.f32.mrb[15].mxu0  ;;  %v2005_v46 = vpop.f32.mrb[15].mxu1 }
 0x8a5   :  { %v2012_v49 = vcombine.low %v1932_v58, %v1934_v45  ;;  %v2013_v55 = vcombine.low %v2003_v59, %v2005_v46 }
 0x8a7   :  { %v2020_v56 = vrot.slane %v2012_v49, %v3077_v60  ;;  %v2027_v61 = vrot.slane %v2013_v55, %v3077_v60 }
 0x8a9   :  { %v2028_v62 = vcombine.low %v2020_v56, %v2027_v61  ;;  %v2029_v12 = vcombine.high %v2020_v56, %v2027_v61 }
 0x8ab   :  { %v2036_v5 = vrot.slane %v2028_v62, %v3077_v60  ;;  %v2043_v23 = vrot.slane %v2029_v12, %v3077_v60 }
 0x8ad   :  { %v2046_v24 = vadd.f32 %v2036_v5, %v1845_v14  ;;  %v2047_v30 = vadd.f32 %v2043_v23, %v1847_v3 }
 0x8af   :  { %v2161_v32 = vmul.f32 -1.442695, %v2046_v24  ;;  %v2162_v6 = vmul.f32 -1.442695, %v2047_v30  ;;  %v2062_v17 = vrot.slane %v2046_v24, 3  ;;  %v2063_v22 = vrot.slane %v2047_v30, 3 }
 0x8b1   :  { %2798 = vpow2.f32 %v2161_v32 }
 0x8b2   :  { %2800 = vpow2.f32 %v2162_v6 }
 0x8bb   :  { %v2799_v0 = vpop.eup %2798 }
 0x8bc   :  { %v2801_v9 = vpop.eup %2800  ;;  %v2054_v13 = vadd.f32 1.0, %v2799_v0 }
 0x8bd   :  { %v2055_v18 = vadd.f32 1.0, %v2801_v9 }
 0x8be   :  { %2802 = vrcp.f32 %v2054_v13 }
 0x8bf   :  { %2804 = vrcp.f32 %v2055_v18 }
 0x8c0   :  { %2806 = vtanh.f32 %v2062_v17 }
 0x8c1   :  { %2808 = vtanh.f32 %v2063_v22 }
 0x8c8   :  { %v2803_v26 = vpop.eup %2802 }
 0x8c9   :  { %v2805_v27 = vpop.eup %2804  ;;  %v2070_v31 = vrot.slane %v2803_v26, 1  ;;  %v2082_v7 = vrot.slane %v2803_v26, 2 }
 0x8ca   :  { %v2807_v35 = vpop.eup %2806  ;;  %v2071_v39 = vrot.slane %v2805_v27, 1  ;;  %v2083_v20 = vrot.slane %v2805_v27, 2 }
 0x8cb   :  { %v2809_v40 = vpop.eup %2808  ;;  %v2074_v44 = vmul.f32 %v2070_v31, %v1832_v11  ;;  %v2076_v51 = vmul.f32 %v2807_v35, %v2803_v26 }
 0x8cc   :  { %v2075_v52 = vmul.f32 %v2071_v39, %v1833_v15  ;;  %v2077_v53 = vmul.f32 %v2809_v40, %v2805_v27 }
 0x8cd   :  { %v2078_v57 = vadd.f32 %v2076_v51, %v2074_v44 }
 0x8ce   :  { %v2079_v63 = vadd.f32 %v2077_v53, %v2075_v52 }
 0x8cf   :  { %2810 = vtanh.f32 %v2078_v57 }
 0x8d0   :  { %2812 = vtanh.f32 %v2079_v63  ;;  %v2111_v1 = vcombine.low %v2078_v57, %v2079_v63 }
 0x8d2   :  { %v2118_v2 = vrot.slane %v2111_v1, %v3077_v60 }
 0x8d4   :  { %2164 = vst.sshfl [vmem:[#allocation3] sm:$0x5 pattern:$0x73625140] %v2118_v2 }
 0x8d9   :  { %v2811_v16 = vpop.eup %2810 }
 0x8da   :  { %v2813_v21 = vpop.eup %2812  ;;  %v2086_v28 = vmul.f32 %v2811_v16, %v2082_v7 }
 0x8db   :  { %v2087_v36 = vmul.f32 %v2813_v21, %v2083_v20 }
 0x8dc   :  { %2088 = vst [vmem:[#allocation9 + $0x7] sm:$0x1] %v2086_v28 }
 0x8dd   :  { %2089 = vst [vmem:[#allocation9 + $0xf] sm:$0x1] %v2087_v36  ;;  %v2092_v37 = vcombine.low %v2086_v28, %v2087_v36 }
 0x8de   :  { %2869 = shalt.err (!%p2866_p6)
}
 0x8df   :  { %s2870_s15 = scalar_lea.hbm %s3394_s3, 256 }
 0x8e0   :  { %p2871_p7 = scmp.ne.s32.totalorder %s3394_s3, %s2870_s15  ;;  %p2874_p8 = scmp.lt.u32.totalorder %s2870_s15, %s3394_s3 }
 0x8e2   :  { %p2876_p9 = pnand %p2874_p8, %p2871_p7 }
 0x8e4   :  { %2879 = shalt.err (!%p2876_p9)
}
 0x8e5   :  { %s2893_s20 = smov 128   ;;  %s2894_s21 = smov 8   ;;  %v2099_v38 = vrot.slane %v2092_v37, %v3077_v60 }
 0x8e6   :  { %2139 = dma.vmem_to_hbm [thread:$0]  %s2134_s11, 256, %s3394_s3, [#allocation6], %s2893_s20, %s2893_s20, %s2894_s21  }
 0x8e7   :  { %2163 = vst.sshfl [vmem:[#allocation2] sm:$0x5 pattern:$0x73625140] %v2099_v38 }
 0x8e8   :  { %2884 = dma.done.wait [#allocation6], 256  }
 0x8e9   :  { %2885 = vsyncadd [#allocation6], 4294967040 }
 0x8ea   :  { %2143 = vsyncpa [#allocation5], 1 }
 0x8eb   :  { %2144 = vsyncpa [#allocation8], 1 }
 0x8ec   :  { %2145 = vsyncpa [#allocation6], 1 }

</bundles_post_ra>
